<compile_context>
chip_gen: v6e
topology: v6e:2x2x1
jax: 0.10.0
libtpu: 0.0.40
codegen_flags: <defaults>
</compile_context>

<pallas_src>
import jax
import jax.numpy as jnp
import numpy as np
from jax import lax
from jax.experimental import pallas as pl
from jax.experimental.pallas import tpu as pltpu


# ----------------------------- fused Pallas kernel -----------------------------

def _make_fused_bottleneck_kernel(D, H, W):
    M = D * H * W
    # Flat-lane offset of each 3x3x3 tap (kd, kh, kw), k = kd*9 + kh*3 + kw.
    offsets = [(kd - 1) * H * W + (kh - 1) * W + (kw - 1)
               for kd in range(3) for kh in range(3) for kw in range(3)]

    def kernel(x_ref, w1t_ref, b1_ref, w2t_ref, b2_ref, w3t_ref, b3_ref,
               mask_ref, o_ref):
        # x_ref block: (1, cin, M) channels-first, lanes = flattened D*H*W.
        x = x_ref[0].astype(jnp.float32)                        # (cin, M)

        # ---- conv1 (1x1x1) + bn1 + relu; BN scale folded into w1t ----
        h1 = jnp.dot(w1t_ref[...], x, preferred_element_type=jnp.float32)
        h1 = jnp.maximum(h1 + b1_ref[...], 0.0)                 # (mid, M)

        # ---- conv2 (grouped 3x3x3, pad=1) + bn2 + relu ----
        # Each tap = lane roll by the flat offset (XLU) + zero the positions
        # whose true 3-D neighbour is out of bounds (VPU).  The 27 masked
        # taps are stacked along sublanes (aligned 8-row pieces) and reduced
        # with a single (mid, 27*mid) x (27*mid, M) MXU matmul.
        masks = mask_ref[...]                                   # (27, M)
        taps = []
        for k, off in enumerate(offsets):
            if off == 0:
                taps.append(h1)                                 # centre tap: always valid
            else:
                t = pltpu.roll(h1, shift=(-off) % M, axis=1)
                taps.append(t * masks[k:k + 1, :])
        im2col = jnp.concatenate(taps, axis=0)                  # (27*mid, M)
        h2 = jnp.dot(w2t_ref[...], im2col, preferred_element_type=jnp.float32)
        h2 = jnp.maximum(h2 + b2_ref[...], 0.0)                 # (mid, M)

        # ---- conv3 (1x1x1) + bn3 + residual add + relu ----
        y = jnp.dot(w3t_ref[...], h2, preferred_element_type=jnp.float32)
        y = jnp.maximum(y + b3_ref[...] + x, 0.0)               # (cout, M)
        o_ref[0] = y.astype(o_ref.dtype)                        # lane-dense store

    return kernel


# ----------------------------- wrapper -----------------------------

def _tap_masks(D, H, W):
    """(27, D*H*W) float mask: 1.0 where the tap's 3-D neighbour is in-bounds."""
    d = np.arange(D)[:, None, None]
    h = np.arange(H)[None, :, None]
    w = np.arange(W)[None, None, :]
    rows = []
    for kd in range(3):
        for kh in range(3):
            for kw in range(3):
                od, oh, ow = kd - 1, kh - 1, kw - 1
                valid = ((d + od >= 0) & (d + od < D) &
                         (h + oh >= 0) & (h + oh < H) &
                         (w + ow >= 0) & (w + ow < W))
                rows.append(valid.reshape(D * H * W))
    return jnp.asarray(np.stack(rows).astype(np.float32))


def _prepare_kernel_params(p):
    """Fold BN scales into the conv weights; transpose for channels-first matmuls."""
    mid = p['mid']
    w1t = (p['w1'] * p['scale1'][None, :]).T                     # (mid, cin)
    b1 = p['shift1'][:, None]                                    # (mid, 1)
    w2s = p['w2'] * p['scale2'][None, None, None, None, :]       # (3,3,3,mid,mid)
    w2t = jnp.transpose(w2s, (4, 0, 1, 2, 3)).reshape(mid, 27 * mid)  # (mid, 27*mid)
    b2 = p['shift2'][:, None]                                    # (mid, 1)
    w3t = (p['w3'] * p['scale3'][None, :]).T                     # (out_ch, mid)
    b3 = p['shift3'][:, None]                                    # (out_ch, 1)
    return dict(w1t=w1t, b1=b1, w2t=w2t, b2=b2, w3t=w3t, b3=b3)


def resnext_bottleneck_forward(x_ncdhw, p):
    # stride=1, downsample=None path of the module.
    N, C, D, H, W = x_ncdhw.shape
    mid, out_ch = p['mid'], p['out_ch']
    assert C == out_ch, "identity residual requires inplanes == planes*expansion"
    M = D * H * W

    kp = _prepare_kernel_params(p)
    masks = _tap_masks(D, H, W)
    x_cf = x_ncdhw.reshape(N, C, M)            # free reshape (no transpose/pad)

    kernel = _make_fused_bottleneck_kernel(D, H, W)
    out_cf = pl.pallas_call(
        kernel,
        out_shape=jax.ShapeDtypeStruct((N, out_ch, M), x_ncdhw.dtype),
        grid_spec=pltpu.PrefetchScalarGridSpec(
            num_scalar_prefetch=0,
            # One grid step per sample; "parallel" shards samples across the
            # two TensorCores on v7x.
            # TODO(synk): for large D*H*W (or v7x's 64 MiB VMEM), tile over D
            # with a 1-voxel halo instead of whole-sample blocks.
            grid=(N,),
            in_specs=[
                pl.BlockSpec((1, C, M), lambda n: (n, 0, 0)),        # x (residual)
                pl.BlockSpec((mid, C), lambda n: (0, 0)),            # w1t (scale folded)
                pl.BlockSpec((mid, 1), lambda n: (0, 0)),            # shift1
                pl.BlockSpec((mid, 27 * mid), lambda n: (0, 0)),     # w2t (scale folded)
                pl.BlockSpec((mid, 1), lambda n: (0, 0)),            # shift2
                pl.BlockSpec((out_ch, mid), lambda n: (0, 0)),       # w3t (scale folded)
                pl.BlockSpec((out_ch, 1), lambda n: (0, 0)),         # shift3
                pl.BlockSpec((27, M), lambda n: (0, 0)),             # border masks
            ],
            out_specs=pl.BlockSpec((1, out_ch, M), lambda n: (n, 0, 0)),
        ),
        compiler_params=pltpu.CompilerParams(
            dimension_semantics=("parallel",)),
    )(x_cf, kp['w1t'], kp['b1'], kp['w2t'], kp['b2'], kp['w3t'], kp['b3'], masks)
    return out_cf.reshape(N, out_ch, D, H, W)


# ----------------------------- parameters -----------------------------

def fold_bn(gamma, beta, mean, var, eps=1e-5):
    scale = gamma / jnp.sqrt(var + eps)
    shift = beta - mean * scale
    return scale, shift


def make_params(key, inplanes, planes, cardinality):
    expansion = 2
    mid = cardinality * (planes // 32)
    out_ch = planes * expansion
    gs = mid // cardinality
    ks = jax.random.split(key, 8)

    def bn(k, c):
        k1, k2, k3, k4 = jax.random.split(k, 4)
        gamma = jax.random.uniform(k1, (c,), minval=0.5, maxval=1.5)
        beta = 0.1 * jax.random.normal(k2, (c,))
        mean = 0.1 * jax.random.normal(k3, (c,))
        var = jax.random.uniform(k4, (c,), minval=0.5, maxval=1.5)
        return fold_bn(gamma, beta, mean, var)

    # conv1: 1x1x1, inplanes -> mid (stored as (Cin, Cout) matmul weight).
    w1 = 0.1 * jax.random.normal(ks[0], (inplanes, mid), jnp.float32)
    scale1, shift1 = bn(ks[1], mid)

    # conv2: grouped 3x3x3; dense DHWIO weight with block-diagonal channel
    # structure (PyTorch grouping: output group g reads input group g).
    # TODO(synk): at realistic cardinality/mid sizes exploit the group
    # structure instead of a dense block-diagonal weight (cardinality x
    # redundant FLOPs / weight footprint).
    w2g = 0.1 * jax.random.normal(ks[2], (cardinality, 3, 3, 3, gs, gs),
                                  jnp.float32)
    w2 = jnp.zeros((3, 3, 3, mid, mid), jnp.float32)
    for g in range(cardinality):
        w2 = w2.at[:, :, :, g * gs:(g + 1) * gs, g * gs:(g + 1) * gs].set(w2g[g])
    scale2, shift2 = bn(ks[3], mid)

    # conv3: 1x1x1, mid -> planes*expansion.
    w3 = 0.1 * jax.random.normal(ks[4], (mid, out_ch), jnp.float32)
    scale3, shift3 = bn(ks[5], out_ch)

    return dict(w1=w1, scale1=scale1, shift1=shift1,
                w2=w2, scale2=scale2, shift2=shift2,
                w3=w3, scale3=scale3, shift3=shift3,
                mid=mid, out_ch=out_ch)


# ----------------------------- pure-JAX reference -----------------------------

def reference_forward(x_ncdhw, p):
    x = jnp.transpose(x_ncdhw, (0, 2, 3, 4, 1))                 # NDHWC
    h = jnp.einsum('ndhwc,ck->ndhwk', x, p['w1'])
    h = jnp.maximum(h * p['scale1'] + p['shift1'], 0.0)
    h = lax.conv_general_dilated(
        h, p['w2'], window_strides=(1, 1, 1),
        padding=[(1, 1), (1, 1), (1, 1)],
        dimension_numbers=('NDHWC', 'DHWIO', 'NDHWC'))
    h = jnp.maximum(h * p['scale2'] + p['shift2'], 0.0)
    h = jnp.einsum('ndhwc,ck->ndhwk', h, p['w3'])
    h = jnp.maximum(h * p['scale3'] + p['shift3'] + x, 0.0)
    return jnp.transpose(h, (0, 4, 1, 2, 3))                    # NCDHW


# ----------------------------- main -----------------------------

if __name__ == "__main__":
    # inplanes=128, planes=64, cardinality=4 -> mid_planes=8, out=planes*2=128
    # (inplanes == planes*expansion and stride=1, so downsample is None).
    N, inplanes, planes, cardinality = 2, 128, 64, 4
    D, H, W = 4, 8, 8

    key = jax.random.PRNGKey(0)
    kx, kp = jax.random.split(key)
    x = jax.random.normal(kx, (N, inplanes, D, H, W), jnp.float32)
    params = make_params(kp, inplanes, planes, cardinality)

    out = jax.block_until_ready(resnext_bottleneck_forward(x, params))
    ref = jax.block_until_ready(reference_forward(x, params))

    assert out.shape == (N, planes * 2, D, H, W), out.shape
    np.testing.assert_allclose(np.asarray(out), np.asarray(ref),
                               rtol=1e-4, atol=1e-4)
    print("KERNEL_OK")
</pallas_src>

<mosaic_0001>
module attributes {stable_mosaic.version = 11 : i64} {
  func.func @kernel(%arg0: i32, %arg1: memref<1x128x256xf32, #tpu.memory_space<vmem>>, %arg2: memref<8x128xf32, #tpu.memory_space<vmem>>, %arg3: memref<8x1xf32, #tpu.memory_space<vmem>>, %arg4: memref<8x216xf32, #tpu.memory_space<vmem>>, %arg5: memref<8x1xf32, #tpu.memory_space<vmem>>, %arg6: memref<128x8xf32, #tpu.memory_space<vmem>>, %arg7: memref<128x1xf32, #tpu.memory_space<vmem>>, %arg8: memref<27x256xf32, #tpu.memory_space<vmem>>, %arg9: memref<1x128x256xf32, #tpu.memory_space<vmem>>) attributes {dimension_semantics = [#tpu.dimension_semantics<parallel>], iteration_bounds = array<i64: 2>, scalar_prefetch = 0 : i64, scratch_operands = 0 : i64, tpu.core_type = #tpu.core_type<tc>, window_params = [{transform_indices = @transform_0, window_bounds = array<i64: 1, 128, 256>}, {pipeline_mode = #tpu.pipeline_mode<synchronous>, transform_indices = @transform_1, window_bounds = array<i64: 8, 128>}, {pipeline_mode = #tpu.pipeline_mode<synchronous>, transform_indices = @transform_2, window_bounds = array<i64: 8, 1>}, {pipeline_mode = #tpu.pipeline_mode<synchronous>, transform_indices = @transform_3, window_bounds = array<i64: 8, 216>}, {pipeline_mode = #tpu.pipeline_mode<synchronous>, transform_indices = @transform_4, window_bounds = array<i64: 8, 1>}, {pipeline_mode = #tpu.pipeline_mode<synchronous>, transform_indices = @transform_5, window_bounds = array<i64: 128, 8>}, {pipeline_mode = #tpu.pipeline_mode<synchronous>, transform_indices = @transform_6, window_bounds = array<i64: 128, 1>}, {pipeline_mode = #tpu.pipeline_mode<synchronous>, transform_indices = @transform_7, window_bounds = array<i64: 27, 256>}, {transform_indices = @transform_8, window_bounds = array<i64: 1, 128, 256>}]} {
    %c0 = arith.constant 0 : index
    %c0_0 = arith.constant 0 : index
    %c0_1 = arith.constant 0 : index
    %0 = vector.load %arg1[%c0, %c0_0, %c0_1] : memref<1x128x256xf32, #tpu.memory_space<vmem>>, vector<1x128x256xf32>
    %1 = vector.shape_cast %0 : vector<1x128x256xf32> to vector<128x256xf32>
    %c0_2 = arith.constant 0 : index
    %c0_3 = arith.constant 0 : index
    %2 = vector.load %arg2[%c0_2, %c0_3] : memref<8x128xf32, #tpu.memory_space<vmem>>, vector<8x128xf32>
    %cst = arith.constant dense<0.000000e+00> : vector<8x256xf32>
    %3 = tpu.matmul %2, %1, %cst {dimension_numbers = #tpu.dot_dimension_numbers<[1], [0], [0], [1], [0, 0, 1, 1], [], []>} : vector<8x128xf32>, vector<128x256xf32>, vector<8x256xf32> -> vector<8x256xf32>
    %c0_4 = arith.constant 0 : index
    %c0_5 = arith.constant 0 : index
    %4 = vector.load %arg3[%c0_4, %c0_5] : memref<8x1xf32, #tpu.memory_space<vmem>>, vector<8x1xf32>
    %5 = vector.broadcast %4 : vector<8x1xf32> to vector<8x256xf32>
    %6 = arith.addf %3, %5 : vector<8x256xf32>
    %cst_6 = arith.constant 0.000000e+00 : f32
    %7 = vector.broadcast %cst_6 : f32 to vector<8x256xf32>
    %8 = arith.maximumf %6, %7 : vector<8x256xf32>
    %c0_7 = arith.constant 0 : index
    %c0_8 = arith.constant 0 : index
    %9 = vector.load %arg8[%c0_7, %c0_8] : memref<27x256xf32, #tpu.memory_space<vmem>>, vector<27x256xf32>
    %c73_i32 = arith.constant 73 : i32
    %10 = tpu.dynamic_rotate %8 by %c73_i32 dim 1 : vector<8x256xf32>, i32 -> vector<8x256xf32>
    %11 = vector.extract_strided_slice %9 {offsets = [0, 0], sizes = [1, 256], strides = [1, 1]} : vector<27x256xf32> to vector<1x256xf32>
    %12 = vector.broadcast %11 : vector<1x256xf32> to vector<8x256xf32>
    %13 = arith.mulf %10, %12 : vector<8x256xf32>
    %c72_i32 = arith.constant 72 : i32
    %14 = tpu.dynamic_rotate %8 by %c72_i32 dim 1 : vector<8x256xf32>, i32 -> vector<8x256xf32>
    %15 = vector.extract_strided_slice %9 {offsets = [1, 0], sizes = [1, 256], strides = [1, 1]} : vector<27x256xf32> to vector<1x256xf32>
    %16 = vector.broadcast %15 : vector<1x256xf32> to vector<8x256xf32>
    %17 = arith.mulf %14, %16 : vector<8x256xf32>
    %c71_i32 = arith.constant 71 : i32
    %18 = tpu.dynamic_rotate %8 by %c71_i32 dim 1 : vector<8x256xf32>, i32 -> vector<8x256xf32>
    %19 = vector.extract_strided_slice %9 {offsets = [2, 0], sizes = [1, 256], strides = [1, 1]} : vector<27x256xf32> to vector<1x256xf32>
    %20 = vector.broadcast %19 : vector<1x256xf32> to vector<8x256xf32>
    %21 = arith.mulf %18, %20 : vector<8x256xf32>
    %c65_i32 = arith.constant 65 : i32
    %22 = tpu.dynamic_rotate %8 by %c65_i32 dim 1 : vector<8x256xf32>, i32 -> vector<8x256xf32>
    %23 = vector.extract_strided_slice %9 {offsets = [3, 0], sizes = [1, 256], strides = [1, 1]} : vector<27x256xf32> to vector<1x256xf32>
    %24 = vector.broadcast %23 : vector<1x256xf32> to vector<8x256xf32>
    %25 = arith.mulf %22, %24 : vector<8x256xf32>
    %c64_i32 = arith.constant 64 : i32
    %26 = tpu.dynamic_rotate %8 by %c64_i32 dim 1 : vector<8x256xf32>, i32 -> vector<8x256xf32>
    %27 = vector.extract_strided_slice %9 {offsets = [4, 0], sizes = [1, 256], strides = [1, 1]} : vector<27x256xf32> to vector<1x256xf32>
    %28 = vector.broadcast %27 : vector<1x256xf32> to vector<8x256xf32>
    %29 = arith.mulf %26, %28 : vector<8x256xf32>
    %c63_i32 = arith.constant 63 : i32
    %30 = tpu.dynamic_rotate %8 by %c63_i32 dim 1 : vector<8x256xf32>, i32 -> vector<8x256xf32>
    %31 = vector.extract_strided_slice %9 {offsets = [5, 0], sizes = [1, 256], strides = [1, 1]} : vector<27x256xf32> to vector<1x256xf32>
    %32 = vector.broadcast %31 : vector<1x256xf32> to vector<8x256xf32>
    %33 = arith.mulf %30, %32 : vector<8x256xf32>
    %c57_i32 = arith.constant 57 : i32
    %34 = tpu.dynamic_rotate %8 by %c57_i32 dim 1 : vector<8x256xf32>, i32 -> vector<8x256xf32>
    %35 = vector.extract_strided_slice %9 {offsets = [6, 0], sizes = [1, 256], strides = [1, 1]} : vector<27x256xf32> to vector<1x256xf32>
    %36 = vector.broadcast %35 : vector<1x256xf32> to vector<8x256xf32>
    %37 = arith.mulf %34, %36 : vector<8x256xf32>
    %c56_i32 = arith.constant 56 : i32
    %38 = tpu.dynamic_rotate %8 by %c56_i32 dim 1 : vector<8x256xf32>, i32 -> vector<8x256xf32>
    %39 = vector.extract_strided_slice %9 {offsets = [7, 0], sizes = [1, 256], strides = [1, 1]} : vector<27x256xf32> to vector<1x256xf32>
    %40 = vector.broadcast %39 : vector<1x256xf32> to vector<8x256xf32>
    %41 = arith.mulf %38, %40 : vector<8x256xf32>
    %c55_i32 = arith.constant 55 : i32
    %42 = tpu.dynamic_rotate %8 by %c55_i32 dim 1 : vector<8x256xf32>, i32 -> vector<8x256xf32>
    %43 = vector.extract_strided_slice %9 {offsets = [8, 0], sizes = [1, 256], strides = [1, 1]} : vector<27x256xf32> to vector<1x256xf32>
    %44 = vector.broadcast %43 : vector<1x256xf32> to vector<8x256xf32>
    %45 = arith.mulf %42, %44 : vector<8x256xf32>
    %c9_i32 = arith.constant 9 : i32
    %46 = tpu.dynamic_rotate %8 by %c9_i32 dim 1 : vector<8x256xf32>, i32 -> vector<8x256xf32>
    %47 = vector.extract_strided_slice %9 {offsets = [9, 0], sizes = [1, 256], strides = [1, 1]} : vector<27x256xf32> to vector<1x256xf32>
    %48 = vector.broadcast %47 : vector<1x256xf32> to vector<8x256xf32>
    %49 = arith.mulf %46, %48 : vector<8x256xf32>
    %c8_i32 = arith.constant 8 : i32
    %50 = tpu.dynamic_rotate %8 by %c8_i32 dim 1 : vector<8x256xf32>, i32 -> vector<8x256xf32>
    %51 = vector.extract_strided_slice %9 {offsets = [10, 0], sizes = [1, 256], strides = [1, 1]} : vector<27x256xf32> to vector<1x256xf32>
    %52 = vector.broadcast %51 : vector<1x256xf32> to vector<8x256xf32>
    %53 = arith.mulf %50, %52 : vector<8x256xf32>
    %c7_i32 = arith.constant 7 : i32
    %54 = tpu.dynamic_rotate %8 by %c7_i32 dim 1 : vector<8x256xf32>, i32 -> vector<8x256xf32>
    %55 = vector.extract_strided_slice %9 {offsets = [11, 0], sizes = [1, 256], strides = [1, 1]} : vector<27x256xf32> to vector<1x256xf32>
    %56 = vector.broadcast %55 : vector<1x256xf32> to vector<8x256xf32>
    %57 = arith.mulf %54, %56 : vector<8x256xf32>
    %c1_i32 = arith.constant 1 : i32
    %58 = tpu.dynamic_rotate %8 by %c1_i32 dim 1 : vector<8x256xf32>, i32 -> vector<8x256xf32>
    %59 = vector.extract_strided_slice %9 {offsets = [12, 0], sizes = [1, 256], strides = [1, 1]} : vector<27x256xf32> to vector<1x256xf32>
    %60 = vector.broadcast %59 : vector<1x256xf32> to vector<8x256xf32>
    %61 = arith.mulf %58, %60 : vector<8x256xf32>
    %c255_i32 = arith.constant 255 : i32
    %62 = tpu.dynamic_rotate %8 by %c255_i32 dim 1 : vector<8x256xf32>, i32 -> vector<8x256xf32>
    %63 = vector.extract_strided_slice %9 {offsets = [14, 0], sizes = [1, 256], strides = [1, 1]} : vector<27x256xf32> to vector<1x256xf32>
    %64 = vector.broadcast %63 : vector<1x256xf32> to vector<8x256xf32>
    %65 = arith.mulf %62, %64 : vector<8x256xf32>
    %c249_i32 = arith.constant 249 : i32
    %66 = tpu.dynamic_rotate %8 by %c249_i32 dim 1 : vector<8x256xf32>, i32 -> vector<8x256xf32>
    %67 = vector.extract_strided_slice %9 {offsets = [15, 0], sizes = [1, 256], strides = [1, 1]} : vector<27x256xf32> to vector<1x256xf32>
    %68 = vector.broadcast %67 : vector<1x256xf32> to vector<8x256xf32>
    %69 = arith.mulf %66, %68 : vector<8x256xf32>
    %c248_i32 = arith.constant 248 : i32
    %70 = tpu.dynamic_rotate %8 by %c248_i32 dim 1 : vector<8x256xf32>, i32 -> vector<8x256xf32>
    %71 = vector.extract_strided_slice %9 {offsets = [16, 0], sizes = [1, 256], strides = [1, 1]} : vector<27x256xf32> to vector<1x256xf32>
    %72 = vector.broadcast %71 : vector<1x256xf32> to vector<8x256xf32>
    %73 = arith.mulf %70, %72 : vector<8x256xf32>
    %c247_i32 = arith.constant 247 : i32
    %74 = tpu.dynamic_rotate %8 by %c247_i32 dim 1 : vector<8x256xf32>, i32 -> vector<8x256xf32>
    %75 = vector.extract_strided_slice %9 {offsets = [17, 0], sizes = [1, 256], strides = [1, 1]} : vector<27x256xf32> to vector<1x256xf32>
    %76 = vector.broadcast %75 : vector<1x256xf32> to vector<8x256xf32>
    %77 = arith.mulf %74, %76 : vector<8x256xf32>
    %c201_i32 = arith.constant 201 : i32
    %78 = tpu.dynamic_rotate %8 by %c201_i32 dim 1 : vector<8x256xf32>, i32 -> vector<8x256xf32>
    %79 = vector.extract_strided_slice %9 {offsets = [18, 0], sizes = [1, 256], strides = [1, 1]} : vector<27x256xf32> to vector<1x256xf32>
    %80 = vector.broadcast %79 : vector<1x256xf32> to vector<8x256xf32>
    %81 = arith.mulf %78, %80 : vector<8x256xf32>
    %c200_i32 = arith.constant 200 : i32
    %82 = tpu.dynamic_rotate %8 by %c200_i32 dim 1 : vector<8x256xf32>, i32 -> vector<8x256xf32>
    %83 = vector.extract_strided_slice %9 {offsets = [19, 0], sizes = [1, 256], strides = [1, 1]} : vector<27x256xf32> to vector<1x256xf32>
    %84 = vector.broadcast %83 : vector<1x256xf32> to vector<8x256xf32>
    %85 = arith.mulf %82, %84 : vector<8x256xf32>
    %c199_i32 = arith.constant 199 : i32
    %86 = tpu.dynamic_rotate %8 by %c199_i32 dim 1 : vector<8x256xf32>, i32 -> vector<8x256xf32>
    %87 = vector.extract_strided_slice %9 {offsets = [20, 0], sizes = [1, 256], strides = [1, 1]} : vector<27x256xf32> to vector<1x256xf32>
    %88 = vector.broadcast %87 : vector<1x256xf32> to vector<8x256xf32>
    %89 = arith.mulf %86, %88 : vector<8x256xf32>
    %c193_i32 = arith.constant 193 : i32
    %90 = tpu.dynamic_rotate %8 by %c193_i32 dim 1 : vector<8x256xf32>, i32 -> vector<8x256xf32>
    %91 = vector.extract_strided_slice %9 {offsets = [21, 0], sizes = [1, 256], strides = [1, 1]} : vector<27x256xf32> to vector<1x256xf32>
    %92 = vector.broadcast %91 : vector<1x256xf32> to vector<8x256xf32>
    %93 = arith.mulf %90, %92 : vector<8x256xf32>
    %c192_i32 = arith.constant 192 : i32
    %94 = tpu.dynamic_rotate %8 by %c192_i32 dim 1 : vector<8x256xf32>, i32 -> vector<8x256xf32>
    %95 = vector.extract_strided_slice %9 {offsets = [22, 0], sizes = [1, 256], strides = [1, 1]} : vector<27x256xf32> to vector<1x256xf32>
    %96 = vector.broadcast %95 : vector<1x256xf32> to vector<8x256xf32>
    %97 = arith.mulf %94, %96 : vector<8x256xf32>
    %c191_i32 = arith.constant 191 : i32
    %98 = tpu.dynamic_rotate %8 by %c191_i32 dim 1 : vector<8x256xf32>, i32 -> vector<8x256xf32>
    %99 = vector.extract_strided_slice %9 {offsets = [23, 0], sizes = [1, 256], strides = [1, 1]} : vector<27x256xf32> to vector<1x256xf32>
    %100 = vector.broadcast %99 : vector<1x256xf32> to vector<8x256xf32>
    %101 = arith.mulf %98, %100 : vector<8x256xf32>
    %c185_i32 = arith.constant 185 : i32
    %102 = tpu.dynamic_rotate %8 by %c185_i32 dim 1 : vector<8x256xf32>, i32 -> vector<8x256xf32>
    %103 = vector.extract_strided_slice %9 {offsets = [24, 0], sizes = [1, 256], strides = [1, 1]} : vector<27x256xf32> to vector<1x256xf32>
    %104 = vector.broadcast %103 : vector<1x256xf32> to vector<8x256xf32>
    %105 = arith.mulf %102, %104 : vector<8x256xf32>
    %c184_i32 = arith.constant 184 : i32
    %106 = tpu.dynamic_rotate %8 by %c184_i32 dim 1 : vector<8x256xf32>, i32 -> vector<8x256xf32>
    %107 = vector.extract_strided_slice %9 {offsets = [25, 0], sizes = [1, 256], strides = [1, 1]} : vector<27x256xf32> to vector<1x256xf32>
    %108 = vector.broadcast %107 : vector<1x256xf32> to vector<8x256xf32>
    %109 = arith.mulf %106, %108 : vector<8x256xf32>
    %c183_i32 = arith.constant 183 : i32
    %110 = tpu.dynamic_rotate %8 by %c183_i32 dim 1 : vector<8x256xf32>, i32 -> vector<8x256xf32>
    %111 = vector.extract_strided_slice %9 {offsets = [26, 0], sizes = [1, 256], strides = [1, 1]} : vector<27x256xf32> to vector<1x256xf32>
    %112 = vector.broadcast %111 : vector<1x256xf32> to vector<8x256xf32>
    %113 = arith.mulf %110, %112 : vector<8x256xf32>
    %114 = tpu.concatenate %13, %17, %21, %25, %29, %33, %37, %41, %45, %49, %53, %57, %61, %8, %65, %69 in 0 : vector<8x256xf32>, vector<8x256xf32>, vector<8x256xf32>, vector<8x256xf32>, vector<8x256xf32>, vector<8x256xf32>, vector<8x256xf32>, vector<8x256xf32>, vector<8x256xf32>, vector<8x256xf32>, vector<8x256xf32>, vector<8x256xf32>, vector<8x256xf32>, vector<8x256xf32>, vector<8x256xf32>, vector<8x256xf32> -> vector<128x256xf32>
    %115 = tpu.concatenate %73, %77, %81, %85, %89, %93, %97, %101, %105, %109, %113 in 0 : vector<8x256xf32>, vector<8x256xf32>, vector<8x256xf32>, vector<8x256xf32>, vector<8x256xf32>, vector<8x256xf32>, vector<8x256xf32>, vector<8x256xf32>, vector<8x256xf32>, vector<8x256xf32>, vector<8x256xf32> -> vector<88x256xf32>
    %116 = tpu.concatenate %114, %115 in 0 : vector<128x256xf32>, vector<88x256xf32> -> vector<216x256xf32>
    %c0_9 = arith.constant 0 : index
    %c0_10 = arith.constant 0 : index
    %117 = vector.load %arg4[%c0_9, %c0_10] : memref<8x216xf32, #tpu.memory_space<vmem>>, vector<8x216xf32>
    %cst_11 = arith.constant dense<0.000000e+00> : vector<8x256xf32>
    %118 = tpu.matmul %117, %116, %cst_11 {dimension_numbers = #tpu.dot_dimension_numbers<[1], [0], [0], [1], [0, 0, 1, 1], [], []>} : vector<8x216xf32>, vector<216x256xf32>, vector<8x256xf32> -> vector<8x256xf32>
    %c0_12 = arith.constant 0 : index
    %c0_13 = arith.constant 0 : index
    %119 = vector.load %arg5[%c0_12, %c0_13] : memref<8x1xf32, #tpu.memory_space<vmem>>, vector<8x1xf32>
    %120 = vector.broadcast %119 : vector<8x1xf32> to vector<8x256xf32>
    %121 = arith.addf %118, %120 : vector<8x256xf32>
    %cst_14 = arith.constant 0.000000e+00 : f32
    %122 = vector.broadcast %cst_14 : f32 to vector<8x256xf32>
    %123 = arith.maximumf %121, %122 : vector<8x256xf32>
    %c0_15 = arith.constant 0 : index
    %c0_16 = arith.constant 0 : index
    %124 = vector.load %arg6[%c0_15, %c0_16] : memref<128x8xf32, #tpu.memory_space<vmem>>, vector<128x8xf32>
    %cst_17 = arith.constant dense<0.000000e+00> : vector<128x256xf32>
    %125 = tpu.matmul %124, %123, %cst_17 {dimension_numbers = #tpu.dot_dimension_numbers<[1], [0], [0], [1], [0, 0, 1, 1], [], []>} : vector<128x8xf32>, vector<8x256xf32>, vector<128x256xf32> -> vector<128x256xf32>
    %c0_18 = arith.constant 0 : index
    %c0_19 = arith.constant 0 : index
    %126 = vector.load %arg7[%c0_18, %c0_19] : memref<128x1xf32, #tpu.memory_space<vmem>>, vector<128x1xf32>
    %127 = vector.broadcast %126 : vector<128x1xf32> to vector<128x256xf32>
    %128 = arith.addf %125, %127 : vector<128x256xf32>
    %129 = arith.addf %128, %1 : vector<128x256xf32>
    %cst_20 = arith.constant 0.000000e+00 : f32
    %130 = vector.broadcast %cst_20 : f32 to vector<128x256xf32>
    %131 = arith.maximumf %129, %130 : vector<128x256xf32>
    %c0_21 = arith.constant 0 : index
    %c0_22 = arith.constant 0 : index
    %c0_23 = arith.constant 0 : index
    %132 = vector.load %arg9[%c0_21, %c0_22, %c0_23] : memref<1x128x256xf32, #tpu.memory_space<vmem>>, vector<1x128x256xf32>
    %133 = vector.shape_cast %132 : vector<1x128x256xf32> to vector<128x256xf32>
    %134 = vector.shape_cast %131 : vector<128x256xf32> to vector<1x128x256xf32>
    tpu.vector_store %arg9[%c0_21, %c0_22, %c0_23], %134 {strides = array<i32>} : memref<1x128x256xf32, #tpu.memory_space<vmem>>, vector<1x128x256xf32>,
    return
  }
  func.func @transform_0(%arg0: i32) -> (i32, i32, i32) {
    %c0_i32 = arith.constant 0 : i32
    %c0_i32_0 = arith.constant 0 : i32
    %c0_i32_1 = arith.constant 0 : i32
    return %arg0, %c0_i32, %c0_i32_0 : i32, i32, i32
  }
  func.func @transform_1(%arg0: i32) -> (i32, i32) {
    %c0_i32 = arith.constant 0 : i32
    %c0_i32_0 = arith.constant 0 : i32
    %c0_i32_1 = arith.constant 0 : i32
    return %c0_i32, %c0_i32_0 : i32, i32
  }
  func.func @transform_2(%arg0: i32) -> (i32, i32) {
    %c0_i32 = arith.constant 0 : i32
    %c0_i32_0 = arith.constant 0 : i32
    %c0_i32_1 = arith.constant 0 : i32
    return %c0_i32, %c0_i32_0 : i32, i32
  }
  func.func @transform_3(%arg0: i32) -> (i32, i32) {
    %c0_i32 = arith.constant 0 : i32
    %c0_i32_0 = arith.constant 0 : i32
    %c0_i32_1 = arith.constant 0 : i32
    return %c0_i32, %c0_i32_0 : i32, i32
  }
  func.func @transform_4(%arg0: i32) -> (i32, i32) {
    %c0_i32 = arith.constant 0 : i32
    %c0_i32_0 = arith.constant 0 : i32
    %c0_i32_1 = arith.constant 0 : i32
    return %c0_i32, %c0_i32_0 : i32, i32
  }
  func.func @transform_5(%arg0: i32) -> (i32, i32) {
    %c0_i32 = arith.constant 0 : i32
    %c0_i32_0 = arith.constant 0 : i32
    %c0_i32_1 = arith.constant 0 : i32
    return %c0_i32, %c0_i32_0 : i32, i32
  }
  func.func @transform_6(%arg0: i32) -> (i32, i32) {
    %c0_i32 = arith.constant 0 : i32
    %c0_i32_0 = arith.constant 0 : i32
    %c0_i32_1 = arith.constant 0 : i32
    return %c0_i32, %c0_i32_0 : i32, i32
  }
  func.func @transform_7(%arg0: i32) -> (i32, i32) {
    %c0_i32 = arith.constant 0 : i32
    %c0_i32_0 = arith.constant 0 : i32
    %c0_i32_1 = arith.constant 0 : i32
    return %c0_i32, %c0_i32_0 : i32, i32
  }
  func.func @transform_8(%arg0: i32) -> (i32, i32, i32) {
    %c0_i32 = arith.constant 0 : i32
    %c0_i32_0 = arith.constant 0 : i32
    %c0_i32_1 = arith.constant 0 : i32
    return %arg0, %c0_i32, %c0_i32_0 : i32, i32, i32
  }
}

</mosaic_0001>

<bundles_post_ra>
// kernel: tpu_custom_call.1
= control target key start
LH: loop header
LB: loop body
LE: loop exit
PB: predicated region body
PF: predicated region fallthrough
CT: control target
= control target key end

     0   :  { %13 = vsyncpa [#allocation3], 0  ;;  %s2551_s0 = inlined_call_operand.hbm [shape: f32[2,128,256], index: 0, kind: input, shape index: {}]   ;;  %s2552_s1 = inlined_call_operand.vmem [shape: f32[8,128], index: 1, kind: input, shape index: {}]   ;;  %s2553_s2 = inlined_call_operand.vmem [shape: f32[8,1], index: 2, kind: input, shape index: {}]   ;;  %s2554_s3 = inlined_call_operand.vmem [shape: f32[8,216], index: 3, kind: input, shape index: {}]   ;;  %s2555_s4 = inlined_call_operand.vmem [shape: f32[8,1], index: 4, kind: input, shape index: {}]   ;;  %s2556_s5 = inlined_call_operand.vmem [shape: f32[128,8], index: 5, kind: input, shape index: {}]   ;;  %s2557_s6 = inlined_call_operand.vmem [shape: f32[128,1], index: 6, kind: input, shape index: {}]   ;;  %s2558_s7 = inlined_call_operand.vmem [shape: f32[27,256], index: 7, kind: input, shape index: {}]   ;;  %s2559_s8 = inlined_call_operand.hbm [shape: f32[2,128,256], index: 8, kind: output, shape index: {}]  }
   0x1   :  { %15 = vsyncpa [#allocation3 + $0x1], 0 }
   0x2   :  { %16 = vsyncpa [#allocation4], 0 }
   0x3   :  { %18 = vsyncpa [#allocation4 + $0x1], 0  ;;  %s1709_s27 = smov 0   ;;  %s1711_s28 = smov 0  }
   0x4   :  { %s1713_s29 = smov 0   ;;  %s1715_s30 = smov 0  }
   0x5 LB: > { %s1730_s9 = sadd.s32 4294967295, %s1637_s30   ;;  %s1415_s10 = sadd.s32 4294967294, %s1637_s30   ;;  %s1637_s30 = sphi %s1715_s30, %s2576_s30   ;;  %s1633_s29 = sphi %s1713_s29, %s2575_s29   ;;  %s1629_s28 = sphi %s1711_s28, %s2574_s28   ;;  %s1625_s27 = sphi %s1709_s27, %s2573_s27  }
   0x6   : > { %s1734_s11 = sadd.s32 1, %s1637_s30   ;;  %s31_s12 = sadd.s32 1, %s1633_s29 }
   0x7   : > { %s28_s13 = ssub.s32 %s1637_s30, %s1734_s11  ;;  %p38_p0 = scmp.ne.s32.totalorder %s1633_s29, %s1629_s28 }
   0x8   : > { %p29_p1 = scmp.eq.s32.totalorder %s28_s13, 0  ;;  %p39_p2 = scmp.eq.s32.totalorder %s1637_s30, 0 }
   0x9   : > { %p44_p3 = scmp.ne.s32.totalorder %s1629_s28, %s1625_s27  ;;  %p45_p4 = scmp.eq.s32.totalorder %s1730_s9, 0 }
   0xa   : > { %s1746_s14 = scalar_select %p29_p1, %s1633_s29, %s31_s12  }
   0xb   : > { %p1748_p5 = por %p39_p2, %p38_p0  ;;  %p1752_p6 = por %p45_p4, %p44_p3 }
   0xc   : > { %2562 = sst [smem:[#allocation8_spill]] %s1746_s14  ;;  %p215_p7 = scmp.eq.s32.totalorder %s1730_s9, 1 }
   0xd   : > { %s2564_s16 = scalar_select %p1752_p6, 1, 0 }
   0xe   : > { %p221_p8 = scmp.eq.s32.totalorder %s1415_s10, 1  ;;  %p1462_p10 = scmp.lt.s32.totalorder %s1637_s30, 2 }
   0xf   : > { %p1759_p11 = por %p215_p7, %p38_p0  ;;  %s262_s19 = sand.u32 1, %s1633_s29  }
  0x10   : > { %p1763_p12 = por %p221_p8, %p44_p3  ;;  %s1446_s20 = sshll.u32 %s1637_s30, 12 }
  0x11   : > { %s2565_s17 = scalar_select %p1759_p11, 1, 0 }
  0x12   : > { %s2566_s18 = scalar_select %p1763_p12, 1, 0 }
  0x13   : > { %s1418_s21 = sshll.u32 %s262_s19, 8  ;;  %s1772_s24 = scalar_lea.hbm %s2551_s0, %s1446_s20 }
  0x14   : > { %s266_s25 = scalar_lea.vmem [#allocation2], %s1418_s21  ;;  %p1776_p13 = pnand %p1462_p10, %p1748_p5 }
  0x15   : > { %s273_s26 = sshll.u32 %s266_s25, 4  ;;  %s1782_s12 = scalar_lea.sflag [#allocation3], %s262_s19  ;;  %s1780_s26 = int_to_ptr.vmem [resolvable:$true] %s273_s26 }
  0x16   : > { %s1545_s13 = scalar_lea.hbm %s1772_s24, 4096  ;;  %p1547_p1 = pneg %p1776_p13 }
  0x17   : > { %p1546_p0 = scmp.ne.s32.totalorder %s1772_s24, %s1545_s13  ;;  %s1550_s21 = scalar_lea.hbm %s2551_s0, 8192 }
  0x18   : > { %p1551_p4 = scmp.lt.s32.totalorder %s1772_s24, %s2551_s0  ;;  %p1552_p5 = scmp.lt.s32.totalorder %s1550_s21, %s1545_s13 }
  0x19   : > { %p1548_p2 = pnand %p1547_p1, %p1546_p0 }
  0x1a   : > { %p1553_p7 = por %p1552_p5, %p1551_p4 }
  0x1b   : > { %p1549_p3 = pneg %p1548_p2 }
  0x1d   : > { %p1554_p8 = pnand %p1553_p7, %p1549_p3 }
  0x1f   : > { %1557 = shalt.err (!%p1554_p8)
}
  0x20   : > { %s1558_s19 = scalar_lea.vmem %s1780_s26, 4096  ;;  %s1639_s25 = smov [#allocation2]  }
  0x21   : > { %p1559_p10 = scmp.ne.s32.totalorder %s1780_s26, %s1558_s19  ;;  %s1563_s14 = sshll.u32 %s1639_s25, 4  ;;  %s1564_s14 = int_to_ptr.vmem [resolvable:$false] %s1563_s14 }
  0x22   : > { %s1565_s20 = scalar_lea.vmem %s1564_s14, 8192  ;;  %p1566_p2 = scmp.lt.s32.totalorder %s1780_s26, %s1564_s14 }
  0x23   : > { %p1561_p9 = pnand %p1559_p10, %p1547_p1  ;;  %p1567_p12 = scmp.lt.s32.totalorder %s1565_s20, %s1558_s19 }
  0x25   : > { %p1562_p0 = pneg %p1561_p9  ;;  %p1568_p11 = por %p1567_p12, %p1566_p2 }
  0x27   : > { %p1569_p6 = pnand %p1568_p11, %p1562_p0 }
  0x29   : > { %1572 = shalt.err (!%p1569_p6)
}
  0x2a   : > { %s1640_s13 = smov 256   ;;  %s1641_s22 = smov 16  }
  0x2b   : > { %1457 = dma.hbm_to_vmem [thread:$0]  (!%p1776_p13), %s1772_s24, 4096, %s1780_s26, %s1782_s12, %s1640_s13, %s1640_s13, %s1641_s22  }
  0x2c   : > { %p1421_p9 = scmp.ge.s32.totalorder %s1637_s30, 1  ;;  %p281_p1 = scmp.lt.s32.totalorder %s1637_s30, 3 }
  0x2e   : > { %p282_p3 = pnand %p1421_p9, %p281_p1 }
  0x2f   : > { %s1806_s14 = sand.u32 (!%p282_p3), 1, %s1629_s28   ;;  %p2568_p6 = scmp.ne.s32.totalorder (!%p282_p3), %s2564_s16, 0 }
  0x30   : > { %285 = sbr.rel (%p282_p3) target bundleno = 939 (0x3ab), region = 52  ;;  %s1422_s21 = sshll.u32 (!%p282_p3), %s1806_s14, 8 }
  0x31   : > { %s288_s15 = scalar_lea.sflag (!%p282_p3), [#allocation3], %s1806_s14  ;;  %s1812_s23 = scalar_lea.vmem (!%p282_p3), [#allocation2], %s1422_s21 }
  0x35   : > { %1616 = dma.done.wait (%p2568_p6), %s288_s15, 4096  }
  0x36   : > { %1618 = vsyncadd (%p2568_p6), %s288_s15, 4294963200  ;;  %v1642_v0 = vmov 0.0   ;;  %v1643_v1 = vmov 0   ;;  %v355_v2 = vld [vmem:[%s1812_s23 + $0xf8] sm:$0xff]  ;;  %v354_v3 = vld [vmem:[%s1812_s23 + $0xf0] sm:$0xff]  ;;  %s1644_s12 = smov 127  }
  0x37   : > { %427 = vmatprep.mubr.f32.mxu0 %v1642_v0  ;;  %1519 = vset.pattern.permute.xlu0 %v1643_v1  ;;  %v353_v4 = vld [vmem:[%s1812_s23 + $0xe8] sm:$0xff]  ;;  %v352_v5 = vld [vmem:[%s1812_s23 + $0xe0] sm:$0xff]  ;;  %v351_v6 = vld [vmem:[%s1812_s23 + $0xd8] sm:$0xff]  ;;  %s1645_s19 = smov 121   ;;  %s1646_s25 = smov 1   ;;  %vm833_vm0 = vcmask 719872  }
  0x38   : > { %1520 = vset.pattern.permute.xlu1 %v1643_v1  ;;  %363 = vmatprep.subr.mxu0 %v355_v2  ;;  %v350_v7 = vld [vmem:[%s1812_s23 + $0xd0] sm:$0xff]  ;;  %v349_v8 = vld [vmem:[%s1812_s23 + $0xc8] sm:$0xff]  ;;  %v348_v9 = vld [vmem:[%s1812_s23 + $0xc0] sm:$0xff]  ;;  %s1647_s20 = smov 7   ;;  %s1648_s13 = smov 8  }
  0x39   : > { %364 = vmatpush1.msra.mxu0 %v354_v3  ;;  %v1828_v10 = vld [vmem:[%s1812_s23 + $0xb8] sm:$0xff]  ;;  %v1831_v11 = vld [vmem:[%s1812_s23 + $0xb0] sm:$0xff]  ;;  %v345_v12 = vld [vmem:[%s1812_s23 + $0xa8] sm:$0xff]  ;;  %s1649_s22 = smov 9   ;;  %s1650_s15 = smov 55  }
  0x3a   : > { %365 = vmatprep.subr.mxu0 %v353_v4  ;;  %v344_v13 = vld [vmem:[%s1812_s23 + $0xa0] sm:$0xff]  ;;  %v343_v14 = vld [vmem:[%s1812_s23 + $0x98] sm:$0xff]  ;;  %v342_v15 = vld [vmem:[%s1812_s23 + $0x90] sm:$0xff]  ;;  %s1651_s16 = smov 56   ;;  %s1652_s24 = smov 57  }
  0x3b   : > { %366 = vmatpush1.msra.mxu0 %v352_v5  ;;  %v357_v16 = vld [vmem:[%s2553_s2] sm:$0xff]  ;;  %v341_v17 = vld [vmem:[%s1812_s23 + $0x88] sm:$0xff]  ;;  %v339_v19 = vld [vmem:[%s1812_s23 + $0x78] sm:$0xff]  ;;  %s1653_s26 = smov 63   ;;  %s1654_s10 = smov 64  }
  0x3c   : > { %367 = vmatprep.subr.mxu0 %v351_v6  ;;  %360 = vperm.xlu0 %1519, %v357_v16   ;;  %v340_v18 = vld [vmem:[%s1812_s23 + $0x80] sm:$0xff]  ;;  %v338_v20 = vld [vmem:[%s1812_s23 + $0x70] sm:$0xff]  ;;  %v337_v21 = vld [vmem:[%s1812_s23 + $0x68] sm:$0xff]  ;;  %v448_v6 = vlaneseq  ;;  %p2569_p12 = scmp.ne.s32.totalorder %s2565_s17, 0 }
  0x3d   : > { %368 = vmatpush1.msra.mxu0 %v350_v7  ;;  %v336_v22 = vld [vmem:[%s1812_s23 + $0x60] sm:$0xff]  ;;  %v335_v23 = vld [vmem:[%s1812_s23 + $0x58] sm:$0xff]  ;;  %v334_v24 = vld [vmem:[%s1812_s23 + $0x50] sm:$0xff] }
  0x3e   : > { %369 = vmatprep.subr.mxu0 %v349_v8  ;;  %v333_v25 = vld [vmem:[%s1812_s23 + $0x48] sm:$0xff]  ;;  %v332_v26 = vld [vmem:[%s1812_s23 + $0x40] sm:$0xff]  ;;  %v331_v27 = vld [vmem:[%s1812_s23 + $0x38] sm:$0xff] }
  0x3f   : > { %370 = vmatpush1.msra.mxu0 %v348_v9  ;;  %v330_v28 = vld [vmem:[%s1812_s23 + $0x30] sm:$0xff]  ;;  %v1855_v29 = vld [vmem:[%s1812_s23 + $0x28] sm:$0xff]  ;;  %v1858_v30 = vld [vmem:[%s1812_s23 + $0x20] sm:$0xff]  ;;  %v1978_v9 = vshrl.u32 %v448_v6, 7 }
  0x40   : > { %371 = vmatprep.subr.mxu0 %v1828_v10  ;;  %v1861_v31 = vld [vmem:[%s1812_s23 + $0x18] sm:$0xff]  ;;  %v1865_v32 = vld [vmem:[%s1812_s23 + $0x10] sm:$0xff]  ;;  %v1869_v33 = vld [vmem:[%s1812_s23 + $0x8] sm:$0xff] }
  0x41   : > { %372 = vmatpush1.msra.mxu0 %v1831_v11  ;;  %v1873_v34 = vld [vmem:[%s1812_s23] sm:$0xff]  ;;  %v928_v44 = vld [vmem:[%s2557_s6 + $0x10] sm:$0xff]  ;;  %v826_v45 = vld [vmem:[%s2554_s3 + $0x8] sm:$0xff]  ;;  %v1990_v16 = vsub.s32 6, %v1978_v9 }
  0x42   : > { %373 = vmatprep.subr.mxu0 %v345_v12  ;;  %v356_v35 = vld [vmem:[%s2552_s1] sm:$0xff]  ;;  %1424 = vmatprep.mubr.msk.f32.mxu1 %vm833_vm0, %v826_v45  ;;  %v932_v47 = vld [vmem:[%s2557_s6 + $0x30] sm:$0xff]  ;;  %v927_v53 = vld [vmem:[%s2557_s6 + $0x8] sm:$0xff]  ;;  %v1980_v12 = vand.u32 127, %v448_v6 }
  0x43   : > { %374 = vmatpush1.msra.mxu0 %v344_v13  ;;  %v926_v43 = vld [vmem:[%s2557_s6] sm:$0xff]  ;;  %v936_v49 = vld [vmem:[%s2557_s6 + $0x50] sm:$0xff]  ;;  %v929_v54 = vld [vmem:[%s2557_s6 + $0x18] sm:$0xff]  ;;  %v1983_v13 = vsub.s32 7, %v1978_v9 }
  0x44   : > { %375 = vmatprep.subr.mxu0 %v343_v14  ;;  %v930_v46 = vld [vmem:[%s2557_s6 + $0x20] sm:$0xff]  ;;  %v940_v52 = vld [vmem:[%s2557_s6 + $0x70] sm:$0xff]  ;;  %v931_v55 = vld [vmem:[%s2557_s6 + $0x28] sm:$0xff]  ;;  %vm688_vm1 = vcmp.lt.s32.totalorder %v1980_v12, 121  ;;  %vm671_vm2 = vcmp.lt.s32.totalorder %v1980_v12, 127  ;;  %vm654_vm3 = vcmp.lt.s32.totalorder %v1980_v12, 1 }
  0x45   : > { %376 = vmatpush1.msra.mxu0 %v342_v15  ;;  %v934_v48 = vld [vmem:[%s2557_s6 + $0x40] sm:$0xff]  ;;  %v933_v56 = vld [vmem:[%s2557_s6 + $0x38] sm:$0xff]  ;;  %v935_v57 = vld [vmem:[%s2557_s6 + $0x48] sm:$0xff]  ;;  %vm637_vm4 = vcmp.lt.s32.totalorder %v1980_v12, 7  ;;  %vm620_vm5 = vcmp.lt.s32.totalorder %v1980_v12, 8  ;;  %vm603_vm6 = vcmp.lt.s32.totalorder %v1980_v12, 9 }
  0x46   : > { %377 = vmatprep.subr.mxu0 %v341_v17  ;;  %v938_v50 = vld [vmem:[%s2557_s6 + $0x60] sm:$0xff]  ;;  %v937_v58 = vld [vmem:[%s2557_s6 + $0x58] sm:$0xff]  ;;  %v939_v61 = vld [vmem:[%s2557_s6 + $0x68] sm:$0xff]  ;;  %vm586_vm7 = vcmp.lt.s32.totalorder %v1980_v12, 55  ;;  %vm569_vm8 = vcmp.lt.s32.totalorder %v1980_v12, 56  ;;  %vm552_vm9 = vcmp.lt.s32.totalorder %v1980_v12, 57 }
  0x47   : > { %378 = vmatpush1.msra.mxu0 %v340_v18  ;;  %v827_v51 = vld [vmem:[%s2555_s4] sm:$0xff]  ;;  %v941_v1 = vld [vmem:[%s2557_s6 + $0x78] sm:$0xff]  ;;  %v1995_v17 = vld [vmem:[%s2558_s7 + $0x10] sm:$0xff]  ;;  %vm535_vm10 = vcmp.lt.s32.totalorder %v1980_v12, 63  ;;  %vm518_vm11 = vcmp.lt.s32.totalorder %v1980_v12, 64  ;;  %vm501_vm12 = vcmp.lt.s32.totalorder %v1980_v12, 65 }
  0x48   : > { %379 = vmatprep.subr.mxu0 %v339_v19  ;;  %v2000_v18 = vld [vmem:[%s2558_s7 + $0x18] sm:$0xff]  ;;  %vm484_vm13 = vcmp.lt.s32.totalorder %v1980_v12, 71  ;;  %vm467_vm14 = vcmp.lt.s32.totalorder %v1980_v12, 72  ;;  %vm450_vm15 = vcmp.lt.s32.totalorder %v1980_v12, 73  ;;  %vm722_vm0 = vcmp.lt.s32.totalorder %v1980_v12, 119 }
  0x49   : > { %380 = vmatpush1.msra.mxu0 %v338_v20  ;;  %v698_v19 = vrot.slane %v2000_v18, %v1983_v13  ;;  %v694_v20 = vrot.slane %v1995_v17, %v1983_v13 }
  0x4a   : > { %381 = vmatprep.subr.mxu0 %v337_v21 }
  0x4b   : > { %382 = vmatpush1.msra.mxu0 %v336_v22 }
  0x4c   : > { %383 = vmatprep.subr.mxu0 %v335_v23  ;;  %v681_v23 = vrot.slane %v2000_v18, %v1990_v16 }
  0x4d   : > { %384 = vmatpush1.msra.mxu0 %v334_v24  ;;  %v2013_v24 = vsub.s32 4, %v1978_v9 }
  0x4e   : > { %385 = vmatprep.subr.mxu0 %v333_v25 }
  0x4f   : > { %386 = vmatpush1.msra.mxu0 %v332_v26  ;;  %v664_v45 = vrot.slane %v2000_v18, %v2013_v24 }
  0x50   : > { %387 = vmatprep.subr.mxu0 %v331_v27  ;;  %v677_v27 = vrot.slane %v1995_v17, %v1990_v16 }
  0x51   : > { %388 = vmatpush1.msra.mxu0 %v330_v28 }
  0x52   : > { %389 = vmatprep.subr.mxu0 %v1855_v29 }
  0x53   : > { %390 = vmatpush1.msra.mxu0 %v1858_v30 }
  0x54   : > { %391 = vmatprep.subr.mxu0 %v1861_v31 }
  0x55   : > { %392 = vmatpush1.msra.mxu0 %v1865_v32 }
  0x56   : > { %393 = vmatprep.subr.mxu0 %v1869_v33 }
  0x57   : > { %394 = vmatpush1.msra.mxu0 %v1873_v34 }
  0x58   : > { %428 = vmatmul.mubr.f32.vlgmr.msra.gmra.mxu0 %v356_v35 }
  0x59   : > { %1135 = vmatprep.mubr.f32.mxu0 %v1642_v0 }
  0xb7   : > { %v361_v36 = vpop.permute.xlu0 %360 }
 0x118   : > { %v429_v37 = vpop.f32.mrf.mxu0 }
 0x119   : > { %v430_v38 = vadd.f32 %v429_v37, %v361_v36 }
 0x11a   : > { %v431_v39 = vpop.f32.mrf.mxu0 }
 0x11b   : > { %v1882_v40 = vmax.f32 %v430_v38, 0.0  ;;  %v432_v41 = vadd.f32 %v431_v39, %v361_v36  ;;  %v2019_v36 = vsub.s32 3, %v1978_v9  ;;  %v2022_v39 = vsub.s32 2, %v1978_v9 }
 0x11d   : > { %667 = vrot.lane.b32.xlu1 %v1882_v40, %s1644_s12  ;;  %684 = vrot.lane.b32.xlu0 %v1882_v40, %s1645_s19  ;;  %v1886_v42 = vmax.f32 %v432_v41, 0.0 }
 0x121   : > { %650 = vrot.lane.b32.xlu1 %v1882_v40, %s1646_s25  ;;  %669 = vrot.lane.b32.xlu0 %v1886_v42, %s1644_s12  ;;  %s1655_s12 = smov 65  }
 0x125   : > { %633 = vrot.lane.b32.xlu1 %v1882_v40, %s1647_s20  ;;  %652 = vrot.lane.b32.xlu0 %v1886_v42, %s1646_s25  ;;  %s1657_s25 = smov 72  }
 0x129   : > { %616 = vrot.lane.b32.xlu1 %v1882_v40, %s1648_s13  ;;  %635 = vrot.lane.b32.xlu0 %v1886_v42, %s1647_s20  ;;  %s1658_s20 = smov 73  }
 0x12d   : > { %599 = vrot.lane.b32.xlu1 %v1882_v40, %s1649_s22  ;;  %618 = vrot.lane.b32.xlu0 %v1886_v42, %s1648_s13  ;;  %s1659_s13 = smov 119  }
 0x131   : > { %582 = vrot.lane.b32.xlu1 %v1882_v40, %s1650_s15  ;;  %601 = vrot.lane.b32.xlu0 %v1886_v42, %s1649_s22  ;;  %s1660_s22 = smov 120  }
 0x135   : > { %686 = vrot.lane.b32.xlu1 %v1886_v42, %s1645_s19  ;;  %584 = vrot.lane.b32.xlu0 %v1886_v42, %s1650_s15  ;;  %s1656_s19 = smov 71  }
 0x139   : > { %565 = vrot.lane.b32.xlu1 %v1882_v40, %s1651_s16  ;;  %567 = vrot.lane.b32.xlu0 %v1886_v42, %s1651_s16 }
 0x13d   : > { %548 = vrot.lane.b32.xlu1 %v1882_v40, %s1652_s24  ;;  %550 = vrot.lane.b32.xlu0 %v1886_v42, %s1652_s24 }
 0x141   : > { %531 = vrot.lane.b32.xlu1 %v1882_v40, %s1653_s26  ;;  %533 = vrot.lane.b32.xlu0 %v1886_v42, %s1653_s26  ;;  %s1329_s26 = scalar_lea.sflag [#allocation4], %s1806_s14 }
 0x145   : > { %514 = vrot.lane.b32.xlu1 %v1882_v40, %s1654_s10  ;;  %516 = vrot.lane.b32.xlu0 %v1886_v42, %s1654_s10 }
 0x149   : > { %497 = vrot.lane.b32.xlu1 %v1882_v40, %s1655_s12  ;;  %499 = vrot.lane.b32.xlu0 %v1886_v42, %s1655_s12 }
 0x14d   : > { %480 = vrot.lane.b32.xlu1 %v1882_v40, %s1656_s19  ;;  %482 = vrot.lane.b32.xlu0 %v1886_v42, %s1656_s19 }
 0x151   : > { %463 = vrot.lane.b32.xlu1 %v1882_v40, %s1657_s25  ;;  %465 = vrot.lane.b32.xlu0 %v1886_v42, %s1657_s25 }
 0x155   : > { %444 = vrot.lane.b32.xlu1 %v1882_v40, %s1658_s20  ;;  %446 = vrot.lane.b32.xlu0 %v1886_v42, %s1658_s20 }
 0x159   : > { %718 = vrot.lane.b32.xlu1 %v1882_v40, %s1659_s13  ;;  %720 = vrot.lane.b32.xlu0 %v1886_v42, %s1659_s13  ;;  %s2421_s13 = scalar_lea.vmem [#allocation5], %s1422_s21  ;;  %s1447_s21 = sshll.u32 %s1730_s9, 12 }
 0x15a   : > { %s2504_s24 = scalar_lea.hbm %s2559_s8, %s1447_s21 }
 0x15d   : > { %701 = vrot.lane.b32.xlu1 %v1882_v40, %s1660_s22  ;;  %703 = vrot.lane.b32.xlu0 %v1886_v42, %s1660_s22  ;;  %s1342_s22 = sshll.u32 %s2421_s13, 4  ;;  %s2506_s22 = int_to_ptr.vmem [resolvable:$true] %s1342_s22 }
 0x15e   : > { %s1573_s9 = scalar_lea.vmem %s2506_s22, 4096 }
 0x15f   : > { %p1574_p11 = scmp.ne.s32.totalorder %s2506_s22, %s1573_s9 }
 0x161   : > { %944 = vperm.xlu0 %1519, %v926_v43   ;;  %830 = vperm.xlu1 %1520, %v827_v51   ;;  %v2041_v51 = vsub.s32 1, %v1978_v9  ;;  %p1575_p13 = pnand %p1574_p11, %p2569_p12 }
 0x163   : > { %p1576_p4 = pneg %p1575_p13 }
 0x165   : > { %954 = vperm.xlu0 %1519, %v928_v44   ;;  %949 = vperm.xlu1 %1520, %v927_v53  }
 0x169   : > { %964 = vperm.xlu0 %1519, %v930_v46   ;;  %959 = vperm.xlu1 %1520, %v929_v54   ;;  %v630_v54 = vrot.slane %v2000_v18, %v2022_v39 }
 0x16d   : > { %974 = vperm.xlu0 %1519, %v932_v47   ;;  %969 = vperm.xlu1 %1520, %v931_v55   ;;  %v660_v47 = vrot.slane %v1995_v17, %v2013_v24 }
 0x171   : > { %984 = vperm.xlu0 %1519, %v934_v48   ;;  %979 = vperm.xlu1 %1520, %v933_v56  }
 0x175   : > { %994 = vperm.xlu0 %1519, %v936_v49   ;;  %989 = vperm.xlu1 %1520, %v935_v57  }
 0x179   : > { %1004 = vperm.xlu0 %1519, %v938_v50   ;;  %999 = vperm.xlu1 %1520, %v937_v58   ;;  %v647_v50 = vrot.slane %v2000_v18, %v2019_v36 }
 0x17d   : > { %1014 = vperm.xlu0 %1519, %v940_v52   ;;  %1009 = vperm.xlu1 %1520, %v939_v61   ;;  %v643_v52 = vrot.slane %v1995_v17, %v2019_v36  ;;  %v626_v61 = vrot.slane %v1995_v17, %v2022_v39 }
 0x181   : > { %1019 = vperm.xlu1 %1520, %v941_v1  }
 0x18f   : > { %v668_v59 = vpop.permute.xlu1 %667  ;;  %v685_v60 = vpop.permute.xlu0 %684 }
 0x193   : > { %v651_v62 = vpop.permute.xlu1 %650  ;;  %v670_v63 = vpop.permute.xlu0 %669 }
 0x194   : > { %v673_v28 = vsel %vm671_vm2, %v670_v63, %v668_v59  ;;  %v672_v35 = vsel %vm671_vm2, %v668_v59, %v670_v63  ;;  %v2053_v59 = vsub.s32 0, %v1978_v9  ;;  %vm1022_vm2 = vcmask 64512  }
 0x195   : > { %v683_v44 = vmul.f32 %v681_v23, %v673_v28  ;;  %v682_v46 = vmul.f32 %v677_v27, %v672_v35 }
 0x197   : > { %v634_v2 = vpop.permute.xlu1 %633  ;;  %v653_v3 = vpop.permute.xlu0 %652 }
 0x198   : > { %v655_v48 = vsel %vm654_vm3, %v651_v62, %v653_v3  ;;  %v656_v49 = vsel %vm654_vm3, %v653_v3, %v651_v62 }
 0x199   : > { %v666_v57 = vmul.f32 %v664_v45, %v655_v48 }
 0x19b   : > { %v1974_v4 = vpop.permute.xlu1 %616  ;;  %v636_v5 = vpop.permute.xlu0 %635 }
 0x19c   : > { %v638_v53 = vsel %vm637_vm4, %v634_v2, %v636_v5  ;;  %v639_v58 = vsel %vm637_vm4, %v636_v5, %v634_v2  ;;  %v613_v2 = vrot.slane %v2000_v18, %v2041_v51 }
 0x19d   : > { %v649_v63 = vmul.f32 %v647_v50, %v638_v53  ;;  %v648_v3 = vmul.f32 %v643_v52, %v639_v58 }
 0x19f   : > { %v1976_v7 = vpop.permute.xlu1 %599  ;;  %v619_v8 = vpop.permute.xlu0 %618 }
 0x1a0   : > { %v621_v62 = vsel %vm620_vm5, %v1974_v4, %v619_v8  ;;  %v622_v1 = vsel %vm620_vm5, %v619_v8, %v1974_v4 }
 0x1a1   : > { %v632_v8 = vmul.f32 %v630_v54, %v621_v62  ;;  %v631_v23 = vmul.f32 %v626_v61, %v622_v1 }
 0x1a3   : > { %v1985_v14 = vpop.permute.xlu1 %582  ;;  %v1987_v15 = vpop.permute.xlu0 %601 }
 0x1a4   : > { %v604_v4 = vsel %vm603_vm6, %v1976_v7, %v1987_v15 }
 0x1a7   : > { %v687_v21 = vpop.permute.xlu1 %686  ;;  %v2008_v22 = vpop.permute.xlu0 %584 }
 0x1a8   : > { %v689_v25 = vsel %vm688_vm1, %v685_v60, %v687_v21  ;;  %v690_v26 = vsel %vm688_vm1, %v687_v21, %v685_v60  ;;  %v665_v60 = vmul.f32 %v660_v47, %v656_v49  ;;  %v2088_v21 = vld [vmem:[%s2558_s7] sm:$0xff]  ;;  %vm705_vm1 = vcmp.lt.s32.totalorder %v1980_v12, 120 }
 0x1a9   : > { %v700_v37 = vmul.f32 %v698_v19, %v690_v26  ;;  %v699_v38 = vmul.f32 %v694_v20, %v689_v25  ;;  %v605_v19 = vsel %vm603_vm6, %v1987_v15, %v1976_v7  ;;  %v596_v20 = vrot.slane %v2000_v18, %v2053_v59 }
 0x1aa   : > { %v592_v25 = vrot.slane %v1995_v17, %v2053_v59  ;;  %v2097_v7 = vsel %vm586_vm7, %v1985_v14, %v2008_v22  ;;  %v615_v18 = vmul.f32 %v613_v2, %v604_v4  ;;  %v2105_v26 = vsel %vm586_vm7, %v2008_v22, %v1985_v14 }
 0x1ab   : > { %v2024_v41 = vpop.permute.xlu1 %565  ;;  %v2026_v43 = vpop.permute.xlu0 %567  ;;  %837 = vmatprep.subr.mxu1 %v700_v37  ;;  %v575_v28 = vrot.slane %v2088_v21, %v1983_v13  ;;  %v598_v22 = vmul.f32 %v596_v20, %v2097_v7  ;;  %v558_v45 = vrot.slane %v2088_v21, %v1990_v16  ;;  %v524_v58 = vrot.slane %v2088_v21, %v2013_v24 }
 0x1ac   : > { %838 = vmatpush1.msra.mxu1 %v699_v38  ;;  %v2117_v35 = vsel %vm569_vm8, %v2024_v41, %v2026_v43  ;;  %v507_v2 = vrot.slane %v2088_v21, %v2019_v36  ;;  %v490_v4 = vrot.slane %v2088_v21, %v2022_v39 }
 0x1ad   : > { %839 = vmatprep.subr.mxu1 %v683_v44  ;;  %v597_v44 = vmul.f32 %v592_v25, %v2105_v26  ;;  %v473_v25 = vrot.slane %v2088_v21, %v2041_v51 }
 0x1ae   : > { %840 = vmatpush1.msra.mxu1 %v682_v46 }
 0x1af   : > { %v549_v55 = vpop.permute.xlu1 %548  ;;  %v551_v56 = vpop.permute.xlu0 %550  ;;  %841 = vmatprep.subr.mxu1 %v1886_v42  ;;  %v2071_v42 = vld [vmem:[%s2558_s7 + $0x8] sm:$0xff] }
 0x1b0   : > { %842 = vmatpush1.msra.mxu1 %v1882_v40  ;;  %v609_v40 = vrot.slane %v1995_v17, %v2041_v51  ;;  %v579_v15 = vrot.slane %v2071_v42, %v1983_v13  ;;  %v2109_v17 = vsub.s32 5, %v1978_v9  ;;  %v2124_v9 = vsel %vm569_vm8, %v2026_v43, %v2024_v41 }
 0x1b1   : > { %843 = vmatprep.subr.mxu1 %v666_v57  ;;  %v562_v38 = vrot.slane %v2071_v42, %v1990_v16  ;;  %v2134_v46 = vsel %vm552_vm9, %v549_v55, %v551_v56  ;;  %v2139_v41 = vsel %vm552_vm9, %v551_v56, %v549_v55  ;;  %v580_v48 = vmul.f32 %v575_v28, %v2124_v9 }
 0x1b2   : > { %844 = vmatpush1.msra.mxu1 %v665_v60  ;;  %v614_v27 = vmul.f32 %v609_v40, %v605_v19  ;;  %v581_v47 = vmul.f32 %v579_v15, %v2117_v35  ;;  %v545_v43 = vrot.slane %v2071_v42, %v2109_v17  ;;  %v541_v49 = vrot.slane %v2088_v21, %v2109_v17 }
 0x1b3   : > { %v532_v5 = vpop.permute.xlu1 %531  ;;  %v534_v6 = vpop.permute.xlu0 %533  ;;  %845 = vmatprep.subr.mxu1 %v649_v63  ;;  %v564_v54 = vmul.f32 %v562_v38, %v2134_v46  ;;  %v528_v56 = vrot.slane %v2071_v42, %v2013_v24  ;;  %v563_v57 = vmul.f32 %v558_v45, %v2139_v41  ;;  %v511_v63 = vrot.slane %v2071_v42, %v2019_v36 }
 0x1b4   : > { %846 = vmatpush1.msra.mxu1 %v648_v3  ;;  %v2149_v50 = vsel %vm535_vm10, %v532_v5, %v534_v6  ;;  %v2154_v55 = vsel %vm535_vm10, %v534_v6, %v532_v5  ;;  %v494_v19 = vrot.slane %v2071_v42, %v2022_v39  ;;  %v477_v15 = vrot.slane %v2071_v42, %v2041_v51 }
 0x1b5   : > { %847 = vmatprep.subr.mxu1 %v632_v8  ;;  %v547_v61 = vmul.f32 %v545_v43, %v2149_v50  ;;  %v546_v1 = vmul.f32 %v541_v49, %v2154_v55  ;;  %v442_v43 = vld [vmem:[%s2558_s7 + $0x30] sm:$0x7] }
 0x1b6   : > { %848 = vmatpush1.msra.mxu1 %v631_v23 }
 0x1b7   : > { %v515_v37 = vpop.permute.xlu1 %514  ;;  %v517_v14 = vpop.permute.xlu0 %516  ;;  %849 = vmatprep.subr.mxu1 %v615_v18 }
 0x1b8   : > { %850 = vmatpush1.msra.mxu1 %v614_v27  ;;  %v2164_v60 = vsel %vm518_vm11, %v515_v37, %v517_v14  ;;  %v2169_v62 = vsel %vm518_vm11, %v517_v14, %v515_v37 }
 0x1b9   : > { %851 = vmatprep.subr.mxu1 %v598_v22  ;;  %v530_v6 = vmul.f32 %v528_v56, %v2164_v60  ;;  %v529_v20 = vmul.f32 %v524_v58, %v2169_v62  ;;  %v443_v22 = vld [vmem:[%s2558_s7 + $0x38] sm:$0x7] }
 0x1ba   : > { %852 = vmatpush1.msra.mxu1 %v597_v44 }
 0x1bb   : > { %v498_v52 = vpop.permute.xlu1 %497  ;;  %v500_v53 = vpop.permute.xlu0 %499  ;;  %853 = vmatprep.subr.mxu1 %v581_v47  ;;  %v456_v47 = vrot.slane %v2088_v21, %v2053_v59 }
 0x1bc   : > { %854 = vmatpush1.msra.mxu1 %v580_v48  ;;  %v2179_v3 = vsel %vm501_vm12, %v498_v52, %v500_v53  ;;  %v2186_v8 = vsel %vm501_vm12, %v500_v53, %v498_v52  ;;  %v460_v53 = vrot.slane %v2071_v42, %v2053_v59 }
 0x1bd   : > { %855 = vmatprep.subr.mxu1 %v564_v54  ;;  %v513_v18 = vmul.f32 %v511_v63, %v2179_v3  ;;  %v512_v28 = vmul.f32 %v507_v2, %v2186_v8  ;;  %v822_v54 = vrot.slane %v443_v22, %v2022_v39  ;;  %v812_v63 = vrot.slane %v443_v22, %v2041_v51 }
 0x1be   : > { %856 = vmatpush1.msra.mxu1 %v563_v57  ;;  %v818_v57 = vrot.slane %v442_v43, %v2022_v39  ;;  %v808_v2 = vrot.slane %v442_v43, %v2041_v51 }
 0x1bf   : > { %v481_v40 = vpop.permute.xlu1 %480  ;;  %v483_v5 = vpop.permute.xlu0 %482  ;;  %857 = vmatprep.subr.mxu1 %v547_v61 }
 0x1c0   : > { %v2194_v23 = vsel %vm484_vm13, %v481_v40, %v483_v5  ;;  %858 = vmatpush1.msra.mxu1 %v546_v1  ;;  %v2203_v27 = vsel %vm484_vm13, %v483_v5, %v481_v40  ;;  %v2246_v40 = vld [vmem:[%s2558_s7 + $0x28] sm:$0xff]  ;;  %v802_v5 = vrot.slane %v443_v22, %v2053_v59 }
 0x1c1   : > { %859 = vmatprep.subr.mxu1 %v530_v6  ;;  %v496_v38 = vmul.f32 %v494_v19, %v2194_v23  ;;  %v495_v48 = vmul.f32 %v490_v4, %v2203_v27  ;;  %v824_v4 = vmul.f32 %v822_v54, %v2105_v26  ;;  %v2253_v6 = vld [vmem:[%s2558_s7 + $0x20] sm:$0xff]  ;;  %v823_v19 = vmul.f32 %v818_v57, %v2097_v7 }
 0x1c2   : > { %860 = vmatpush1.msra.mxu1 %v529_v20  ;;  %v798_v20 = vrot.slane %v442_v43, %v2053_v59  ;;  %v813_v26 = vmul.f32 %v808_v2, %v2117_v35  ;;  %v782_v7 = vrot.slane %v2246_v40, %v1990_v16  ;;  %v772_v35 = vrot.slane %v2246_v40, %v2109_v17 }
 0x1c3   : > { %v464_v37 = vpop.permute.xlu1 %463  ;;  %v466_v14 = vpop.permute.xlu0 %465  ;;  %861 = vmatprep.subr.mxu1 %v513_v18  ;;  %v788_v18 = vrot.slane %v2253_v6, %v1983_v13  ;;  %v748_v43 = vrot.slane %v2253_v6, %v2019_v36  ;;  %v715_v54 = vrot.slane %v2246_v40, %v2053_v59 }
 0x1c4   : > { %v2213_v44 = vsel %vm467_vm14, %v464_v37, %v466_v14  ;;  %v2217_v45 = vsel %vm467_vm14, %v466_v14, %v464_v37  ;;  %862 = vmatpush1.msra.mxu1 %v512_v28  ;;  %v804_v28 = vmul.f32 %v802_v5, %v2139_v41  ;;  %v803_v37 = vmul.f32 %v798_v20, %v2134_v46  ;;  %v911_v20 = vld [vmem:[%s2556_s5 + $0x8] sm:$0xff] }
 0x1c5   : > { %v478_v49 = vmul.f32 %v473_v25, %v2217_v45  ;;  %v479_v52 = vmul.f32 %v477_v15, %v2213_v44  ;;  %863 = vmatprep.subr.mxu1 %v496_v38  ;;  %v814_v25 = vmul.f32 %v812_v63, %v2124_v9  ;;  %v792_v15 = vrot.slane %v2246_v40, %v1983_v13 }
 0x1c6   : > { %864 = vmatpush1.msra.mxu1 %v495_v48  ;;  %v778_v9 = vrot.slane %v2253_v6, %v1990_v16  ;;  %v793_v13 = vmul.f32 %v788_v18, %v2149_v50  ;;  %v768_v41 = vrot.slane %v2253_v6, %v2109_v17  ;;  %v784_v22 = vmul.f32 %v782_v7, %v2169_v62  ;;  %v913_v18 = vld [vmem:[%s2556_s5 + $0x18] sm:$0xff]  ;;  %v914_v7 = vld [vmem:[%s2556_s5 + $0x20] sm:$0xff] }
 0x1c7   : > { %v445_v56 = vpop.permute.xlu1 %444  ;;  %v447_v21 = vpop.permute.xlu0 %446  ;;  %865 = vmatprep.subr.mxu1 %v479_v52  ;;  %v794_v14 = vmul.f32 %v792_v15, %v2154_v55  ;;  %v762_v46 = vrot.slane %v2246_v40, %v2013_v24  ;;  %v774_v50 = vmul.f32 %v772_v35, %v2186_v8  ;;  %v752_v17 = vrot.slane %v2246_v40, %v2019_v36  ;;  %v912_v15 = vld [vmem:[%s2556_s5 + $0x10] sm:$0xff]  ;;  %v917_v35 = vld [vmem:[%s2556_s5 + $0x38] sm:$0xff] }
 0x1c8   : > { %v2233_v58 = vsel %vm450_vm15, %v445_v56, %v447_v21  ;;  %v2237_v61 = vsel %vm450_vm15, %v447_v21, %v445_v56  ;;  %866 = vmatpush1.msra.mxu1 %v478_v49  ;;  %v783_v55 = vmul.f32 %v778_v9, %v2164_v60  ;;  %v773_v62 = vmul.f32 %v768_v41, %v2179_v3  ;;  %v915_v9 = vld [vmem:[%s2556_s5 + $0x28] sm:$0xff] }
 0x1c9   : > { %v461_v42 = vmul.f32 %v456_v47, %v2237_v61  ;;  %v462_v1 = vmul.f32 %v460_v53, %v2233_v58  ;;  %v758_v47 = vrot.slane %v2253_v6, %v2013_v24  ;;  %v764_v48 = vmul.f32 %v762_v46, %v2203_v27  ;;  %v919_v41 = vld [vmem:[%s2556_s5 + $0x48] sm:$0xff] }
 0x1ca   : > { %v742_v60 = vrot.slane %v2246_v40, %v2022_v39  ;;  %v738_v8 = vrot.slane %v2253_v6, %v2022_v39  ;;  %v754_v3 = vmul.f32 %v752_v17, %v2217_v45  ;;  %v732_v36 = vrot.slane %v2246_v40, %v2041_v51 }
 0x1cb   : > { %867 = vmatprep.subr.mxu1 %v462_v1  ;;  %v719_v38 = vpop.permute.xlu1 %718  ;;  %v721_v16 = vpop.permute.xlu0 %720  ;;  %v763_v24 = vmul.f32 %v758_v47, %v2194_v23  ;;  %v753_v52 = vmul.f32 %v748_v43, %v2213_v44  ;;  %v728_v53 = vrot.slane %v2253_v6, %v2041_v51  ;;  %v711_v44 = vrot.slane %v2253_v6, %v2053_v59  ;;  %v910_v6 = vld [vmem:[%s2556_s5] sm:$0xff] }
 0x1cc   : > { %868 = vmatpush1.msra.mxu1 %v461_v42  ;;  %v724_v23 = vsel %vm722_vm0, %v721_v16, %v719_v38  ;;  %v744_v39 = vmul.f32 %v742_v60, %v2237_v61  ;;  %v723_v45 = vsel %vm722_vm0, %v719_v38, %v721_v16  ;;  %v743_v56 = vmul.f32 %v738_v8, %v2233_v58  ;;  %v825_v58 = vld [vmem:[%s2554_s3] sm:$0xff] }
 0x1cd   : > { %879 = vmatprep.subr.mxu1 %v824_v4  ;;  %v734_v21 = vmul.f32 %v732_v36, %v724_v23  ;;  %v733_v61 = vmul.f32 %v728_v53, %v723_v45 }
 0x1ce   : > { %880 = vmatpush2.msra.mxu1 %v823_v19  ;;  %v921_v19 = vld [vmem:[%s2556_s5 + $0x58] sm:$0xff] }
 0x1cf   : > { %881 = vmatprep.subr.mxu1 %v814_v25  ;;  %v702_v49 = vpop.permute.xlu1 %701  ;;  %v704_v27 = vpop.permute.xlu0 %703  ;;  %v922_v25 = vld [vmem:[%s2556_s5 + $0x60] sm:$0xff] }
 0x1d0   : > { %882 = vmatpush2.msra.mxu1 %v813_v26  ;;  %v707_v51 = vsel %vm705_vm1, %v704_v27, %v702_v49  ;;  %v706_v57 = vsel %vm705_vm1, %v702_v49, %v704_v27  ;;  %v923_v26 = vld [vmem:[%s2556_s5 + $0x68] sm:$0xff] }
 0x1d1   : > { %883 = vmatprep.subr.mxu1 %v804_v28  ;;  %v717_v63 = vmul.f32 %v715_v54, %v707_v51  ;;  %v716_v42 = vmul.f32 %v711_v44, %v706_v57  ;;  %v924_v28 = vld [vmem:[%s2556_s5 + $0x70] sm:$0xff] }
 0x1d2   : > { %884 = vmatpush2.msra.mxu1 %v803_v37  ;;  %v925_v37 = vld [vmem:[%s2556_s5 + $0x78] sm:$0xff] }
 0x1d3   : > { %885 = vmatprep.subr.mxu1 %v794_v14  ;;  %v916_v14 = vld [vmem:[%s2556_s5 + $0x30] sm:$0xff] }
 0x1d4   : > { %886 = vmatpush2.msra.mxu1 %v793_v13  ;;  %v918_v13 = vld [vmem:[%s2556_s5 + $0x40] sm:$0xff] }
 0x1d5   : > { %887 = vmatprep.subr.mxu1 %v784_v22  ;;  %v920_v22 = vld [vmem:[%s2556_s5 + $0x50] sm:$0xff] }
 0x1d6   : > { %888 = vmatpush2.msra.mxu1 %v783_v55 }
 0x1d7   : > { %889 = vmatprep.subr.mxu1 %v774_v50 }
 0x1d8   : > { %890 = vmatpush2.msra.mxu1 %v773_v62 }
 0x1d9   : > { %891 = vmatprep.subr.mxu1 %v764_v48 }
 0x1da   : > { %892 = vmatpush2.msra.mxu1 %v763_v24 }
 0x1db   : > { %893 = vmatprep.subr.mxu1 %v754_v3 }
 0x1dc   : > { %894 = vmatpush2.msra.mxu1 %v753_v52  ;;  %v831_v1 = vpop.permute.xlu1 %830  ;;  %v945_v46 = vpop.permute.xlu0 %944 }
 0x1dd   : > { %895 = vmatprep.subr.mxu1 %v744_v39 }
 0x1de   : > { %896 = vmatpush2.msra.mxu1 %v743_v56 }
 0x1df   : > { %897 = vmatprep.subr.mxu1 %v734_v21 }
 0x1e0   : > { %898 = vmatpush2.msra.mxu1 %v733_v61  ;;  %v950_v38 = vpop.permute.xlu1 %949  ;;  %v2397_v16 = vpop.permute.xlu0 %954 }
 0x1e1   : > { %899 = vmatprep.subr.mxu1 %v717_v63 }
 0x1e2   : > { %900 = vmatpush2.msra.mxu1 %v716_v42 }
 0x1e3   : > { %902 = vmatmul.mubr.f32.vlgmr.msra.gmra.mxu1 %v825_v58 }
 0x1e4   : > { %1201 = vmatprep.mubr.f32.mxu1 %v1642_v0  ;;  %v2399_v55 = vpop.permute.xlu1 %959  ;;  %v2401_v47 = vpop.permute.xlu0 %964 }
 0x1e8   : > { %v2403_v50 = vpop.permute.xlu1 %969  ;;  %v2405_v17 = vpop.permute.xlu0 %974 }
 0x1ec   : > { %v2407_v62 = vpop.permute.xlu1 %979 }
 0x1f0   : > { %v2411_v43 = vpop.permute.xlu1 %989 }
 0x1f4   : > { %v1000_v60 = vpop.permute.xlu1 %999 }
 0x2a3   : > { %v903_v59 = vpop.f32.mrf.mxu1 }
 0x2a4   : > { %v904_v12 = vadd.f32 %v903_v59, %v831_v1 }
 0x2a5   : > { %v905_v2 = vpop.f32.mrf.mxu1 }
 0x2a6   : > { %v906_v40 = vadd.f32 %v905_v2, %v831_v1  ;;  %v908_v5 = vmax.f32 %v904_v12, 0.0  ;;  %v1521_v12 = vld [vmem:[%s1812_s23 + $0xc0] sm:$0xff] }
 0x2a8   : > { %v909_v4 = vmax.f32 %v906_v40, 0.0 }
 0x2aa   : > { %1101 = vmatprep.subr.mxu0 %v909_v4  ;;  %1448 = vmatprep.subr.mxu1 %v909_v4 }
 0x2ab   : > { %1102 = vmatpush1.msra.mxu0 %v908_v5  ;;  %1449 = vmatpush1.msra.mxu1 %v908_v5 }
 0x2ac   : > { %1425 = vmatmul.mubr.msk.f32.vlgmr.msra.gmra.mxu0 %vm1022_vm2, %v910_v6  ;;  %1436 = vmatmul.mubr.msk.f32.vlgmr.msra.gmra.mxu1 %vm1022_vm2, %v921_v19  ;;  %v1522_v6 = vld [vmem:[%s1812_s23 + $0xc8] sm:$0xff] }
 0x2ad   : > { %1141 = vmatprep.mubr.f32.mxu0 %v1642_v0  ;;  %1207 = vmatprep.mubr.f32.mxu1 %v1642_v0 }
 0x2b0   : > { %1426 = vmatmul.mubr.msk.f32.gmra.mxu0 %vm1022_vm2, %v911_v20  ;;  %1437 = vmatmul.mubr.msk.f32.gmra.mxu1 %vm1022_vm2, %v922_v25 }
 0x2b1   : > { %1147 = vmatprep.mubr.f32.mxu0 %v1642_v0  ;;  %1213 = vmatprep.mubr.f32.mxu1 %v1642_v0 }
 0x2b4   : > { %1427 = vmatmul.mubr.msk.f32.gmra.mxu0 %vm1022_vm2, %v912_v15  ;;  %1438 = vmatmul.mubr.msk.f32.gmra.mxu1 %vm1022_vm2, %v923_v26 }
 0x2b5   : > { %1153 = vmatprep.mubr.f32.mxu0 %v1642_v0  ;;  %1219 = vmatprep.mubr.f32.mxu1 %v1642_v0 }
 0x2b8   : > { %1428 = vmatmul.mubr.msk.f32.gmra.mxu0 %vm1022_vm2, %v913_v18  ;;  %1439 = vmatmul.mubr.msk.f32.gmra.mxu1 %vm1022_vm2, %v924_v28 }
 0x2b9   : > { %1159 = vmatprep.mubr.f32.mxu0 %v1642_v0  ;;  %1225 = vmatprep.mubr.f32.mxu1 %v1642_v0 }
 0x2bc   : > { %1429 = vmatmul.mubr.msk.f32.gmra.mxu0 %vm1022_vm2, %v914_v7  ;;  %1440 = vmatmul.mubr.msk.f32.gmra.mxu1 %vm1022_vm2, %v925_v37 }
 0x2bd   : > { %1165 = vmatprep.mubr.f32.mxu0 %v1642_v0 }
 0x2c0   : > { %1430 = vmatmul.mubr.msk.f32.gmra.mxu0 %vm1022_vm2, %v915_v9 }
 0x2c1   : > { %1171 = vmatprep.mubr.f32.mxu0 %v1642_v0 }
 0x2c4   : > { %1431 = vmatmul.mubr.msk.f32.gmra.mxu0 %vm1022_vm2, %v916_v14  ;;  %v1523_v14 = vld [vmem:[%s1812_s23 + $0xd0] sm:$0xff] }
 0x2c5   : > { %1177 = vmatprep.mubr.f32.mxu0 %v1642_v0 }
 0x2c8   : > { %1432 = vmatmul.mubr.msk.f32.gmra.mxu0 %vm1022_vm2, %v917_v35 }
 0x2c9   : > { %1183 = vmatprep.mubr.f32.mxu0 %v1642_v0 }
 0x2cc   : > { %1433 = vmatmul.mubr.msk.f32.gmra.mxu0 %vm1022_vm2, %v918_v13 }
 0x2cd   : > { %1189 = vmatprep.mubr.f32.mxu0 %v1642_v0 }
 0x2d0   : > { %1434 = vmatmul.mubr.msk.f32.gmra.mxu0 %vm1022_vm2, %v919_v41 }
 0x2d1   : > { %1195 = vmatprep.mubr.f32.mxu0 %v1642_v0  ;;  %v2409_v0 = vpop.permute.xlu0 %984 }
 0x2d4   : > { %1435 = vmatmul.mubr.msk.f32.gmra.mxu0 %vm1022_vm2, %v920_v22 }
 0x2d5   : > { %v2413_v48 = vpop.permute.xlu0 %994 }
 0x2d9   : > { %v1005_v56 = vpop.permute.xlu0 %1004 }
 0x2dd   : > { %v1015_v28 = vpop.permute.xlu0 %1014 }
 0x36c   : > { %v1137_v24 = vpop.f32.mrf.mxu0  ;;  %v1203_v8 = vpop.f32.mrf.mxu1 }
 0x36d   : > { %v1138_v3 = vadd.f32 %v1137_v24, %v945_v46  ;;  %v1204_v36 = vadd.f32 %v1203_v8, %v1000_v60  ;;  %v1524_v8 = vld [vmem:[%s1812_s23 + $0xd8] sm:$0xff] }
 0x36e   : > { %v1139_v49 = vpop.f32.mrf.mxu0  ;;  %v1205_v27 = vpop.f32.mrf.mxu1 }
 0x36f   : > { %v1232_v52 = vadd.f32 %v1138_v3, %v1873_v34  ;;  %v1254_v53 = vadd.f32 %v1204_v36, %v1831_v11  ;;  %v1140_v23 = vadd.f32 %v1139_v49, %v945_v46  ;;  %v1206_v39 = vadd.f32 %v1205_v27, %v1000_v60  ;;  %v1010_v34 = vpop.permute.xlu1 %1009 }
 0x370   : > { %v1143_v45 = vpop.f32.mrf.mxu0  ;;  %v1209_v54 = vpop.f32.mrf.mxu1 }
 0x371   : > { %v1264_v44 = vmax.f32 %v1232_v52, 0.0  ;;  %v1286_v51 = vmax.f32 %v1254_v53, 0.0  ;;  %v1233_v21 = vadd.f32 %v1140_v23, %v1869_v33  ;;  %v1255_v57 = vadd.f32 %v1206_v39, %v1828_v10  ;;  %v1526_v52 = vld [vmem:[%s1812_s23 + $0xe0] sm:$0xff] }
 0x372   : > { %v1144_v61 = vadd.f32 %v1143_v45, %v950_v38  ;;  %v1210_v63 = vadd.f32 %v1209_v54, %v1005_v56  ;;  %v1145_v42 = vpop.f32.mrf.mxu0  ;;  %v1211_v58 = vpop.f32.mrf.mxu1 }
 0x373   : > { %1296 = vst [vmem:[%s2421_s13] sm:$0xff] %v1264_v44  ;;  %1318 = vst [vmem:[%s2421_s13 + $0xb0] sm:$0xff] %v1286_v51  ;;  %v1265_v11 = vmax.f32 %v1233_v21, 0.0  ;;  %v1287_v59 = vmax.f32 %v1255_v57, 0.0  ;;  %v1146_v33 = vadd.f32 %v1145_v42, %v950_v38  ;;  %v1212_v1 = vadd.f32 %v1211_v58, %v1005_v56  ;;  %v1020_v44 = vpop.permute.xlu1 %1019  ;;  %v1527_v57 = vld [vmem:[%s1812_s23 + $0x38] sm:$0xff] }
 0x374   : > { %v1234_v10 = vadd.f32 %v1144_v61, %v1865_v32  ;;  %v1256_v2 = vadd.f32 %v1521_v12, %v1210_v63  ;;  %v1149_v40 = vpop.f32.mrf.mxu0  ;;  %v1215_v4 = vpop.f32.mrf.mxu1  ;;  %v1528_v63 = vld [vmem:[%s1812_s23 + $0xe8] sm:$0xff]  ;;  %v1529_v12 = vld [vmem:[%s1812_s23 + $0x40] sm:$0xff] }
 0x375   : > { %1297 = vst [vmem:[%s2421_s13 + $0x8] sm:$0xff] %v1265_v11  ;;  %1319 = vst [vmem:[%s2421_s13 + $0xb8] sm:$0xff] %v1287_v59  ;;  %v1235_v5 = vadd.f32 %v1146_v33, %v1861_v31  ;;  %v1257_v19 = vadd.f32 %v1522_v6, %v1212_v1  ;;  %v1150_v20 = vadd.f32 %v1149_v40, %v2397_v16  ;;  %v1530_v40 = vld [vmem:[%s1812_s23 + $0xf0] sm:$0xff]  ;;  %v1531_v6 = vld [vmem:[%s1812_s23 + $0x48] sm:$0xff] }
 0x376   : > { %v1216_v25 = vadd.f32 %v1215_v4, %v1010_v34  ;;  %v1266_v15 = vmax.f32 %v1234_v10, 0.0  ;;  %v1288_v26 = vmax.f32 %v1256_v2, 0.0  ;;  %v1151_v32 = vpop.f32.mrf.mxu0  ;;  %v1217_v18 = vpop.f32.mrf.mxu1 }
 0x377   : > { %v1267_v7 = vmax.f32 %v1235_v5, 0.0  ;;  %v1289_v37 = vmax.f32 %v1257_v19, 0.0  ;;  %v1236_v9 = vadd.f32 %v1150_v20, %v1858_v30  ;;  %v1152_v35 = vadd.f32 %v1151_v32, %v2397_v16  ;;  %v1525_v16 = vld [vmem:[%s1812_s23 + $0x30] sm:$0xff]  ;;  %v1532_v20 = vld [vmem:[%s1812_s23 + $0xf8] sm:$0xff] }
 0x378   : > { %v1258_v31 = vadd.f32 %v1523_v14, %v1216_v25  ;;  %1298 = vst [vmem:[%s2421_s13 + $0x10] sm:$0xff] %v1266_v15  ;;  %1320 = vst [vmem:[%s2421_s13 + $0xc0] sm:$0xff] %v1288_v26  ;;  %v1218_v13 = vadd.f32 %v1217_v18, %v1010_v34  ;;  %v1155_v41 = vpop.f32.mrf.mxu0  ;;  %v1221_v22 = vpop.f32.mrf.mxu1 }
 0x379   : > { %1299 = vst [vmem:[%s2421_s13 + $0x18] sm:$0xff] %v1267_v7  ;;  %1321 = vst [vmem:[%s2421_s13 + $0xc8] sm:$0xff] %v1289_v37  ;;  %v1268_v46 = vmax.f32 %v1236_v9, 0.0  ;;  %v1156_v30 = vadd.f32 %v1155_v41, %v2399_v55  ;;  %v1222_v60 = vadd.f32 %v1221_v22, %v1015_v28  ;;  %v1237_v24 = vadd.f32 %v1152_v35, %v1855_v29  ;;  %v1533_v7 = vld [vmem:[%s1812_s23 + $0x50] sm:$0xff]  ;;  %v1534_v35 = vld [vmem:[%s1812_s23 + $0x58] sm:$0xff] }
 0x37a   : > { %v1290_v38 = vmax.f32 %v1258_v31, 0.0  ;;  %v1259_v3 = vadd.f32 %v1524_v8, %v1218_v13  ;;  %v1157_v36 = vpop.f32.mrf.mxu0  ;;  %v1223_v49 = vpop.f32.mrf.mxu1  ;;  %v1536_v8 = vld [vmem:[%s1812_s23 + $0x68] sm:$0xff] }
 0x37b   : > { %1300 = vst [vmem:[%s2421_s13 + $0x20] sm:$0xff] %v1268_v46  ;;  %v1238_v27 = vadd.f32 %v1525_v16, %v1156_v30  ;;  %v1260_v53 = vadd.f32 %v1526_v52, %v1222_v60  ;;  %v1158_v23 = vadd.f32 %v1157_v36, %v2399_v55  ;;  %v1224_v39 = vadd.f32 %v1223_v49, %v1015_v28 }
 0x37c   : > { %1322 = vst [vmem:[%s2421_s13 + $0xd0] sm:$0xff] %v1290_v38  ;;  %v1269_v45 = vmax.f32 %v1237_v24, 0.0  ;;  %v1291_v54 = vmax.f32 %v1259_v3, 0.0  ;;  %v1161_v29 = vpop.f32.mrf.mxu0  ;;  %v1227_v56 = vpop.f32.mrf.mxu1  ;;  %v1535_v38 = vld [vmem:[%s1812_s23 + $0x60] sm:$0xff] }
 0x37d   : > { %v1270_v51 = vmax.f32 %v1238_v27, 0.0  ;;  %v1292_v21 = vmax.f32 %v1260_v53, 0.0  ;;  %v1239_v61 = vadd.f32 %v1527_v57, %v1158_v23  ;;  %v1261_v42 = vadd.f32 %v1528_v63, %v1224_v39  ;;  %v1537_v27 = vld [vmem:[%s1812_s23 + $0x70] sm:$0xff]  ;;  %v1538_v39 = vld [vmem:[%s1812_s23 + $0x78] sm:$0xff] }
 0x37e   : > { %1301 = vst [vmem:[%s2421_s13 + $0x28] sm:$0xff] %v1269_v45  ;;  %1323 = vst [vmem:[%s2421_s13 + $0xd8] sm:$0xff] %v1291_v54  ;;  %v1162_v55 = vadd.f32 %v1161_v29, %v2401_v47  ;;  %v1228_v58 = vadd.f32 %v1227_v56, %v1020_v44  ;;  %v1163_v34 = vpop.f32.mrf.mxu0  ;;  %v1229_v11 = vpop.f32.mrf.mxu1 }
 0x37f   : > { %1302 = vst [vmem:[%s2421_s13 + $0x30] sm:$0xff] %v1270_v51  ;;  %1324 = vst [vmem:[%s2421_s13 + $0xe0] sm:$0xff] %v1292_v21  ;;  %v1271_v59 = vmax.f32 %v1239_v61, 0.0  ;;  %v1293_v33 = vmax.f32 %v1261_v42, 0.0  ;;  %v1164_v1 = vadd.f32 %v1163_v34, %v2401_v47  ;;  %v1230_v10 = vadd.f32 %v1229_v11, %v1020_v44  ;;  %v1539_v44 = vld [vmem:[%s1812_s23 + $0x80] sm:$0xff]  ;;  %v1540_v61 = vld [vmem:[%s1812_s23 + $0x88] sm:$0xff] }
 0x380   : > { %v1240_v2 = vadd.f32 %v1529_v12, %v1162_v55  ;;  %v1262_v4 = vadd.f32 %v1530_v40, %v1228_v58  ;;  %v1167_v5 = vpop.f32.mrf.mxu0  ;;  %v1541_v34 = vld [vmem:[%s1812_s23 + $0x90] sm:$0xff] }
 0x381   : > { %1303 = vst [vmem:[%s2421_s13 + $0x38] sm:$0xff] %v1271_v59  ;;  %1325 = vst [vmem:[%s2421_s13 + $0xe8] sm:$0xff] %v1293_v33  ;;  %v1241_v19 = vadd.f32 %v1531_v6, %v1164_v1  ;;  %v1263_v25 = vadd.f32 %v1532_v20, %v1230_v10  ;;  %v1168_v47 = vadd.f32 %v1167_v5, %v2403_v50  ;;  %v1542_v1 = vld [vmem:[%s1812_s23 + $0x98] sm:$0xff] }
 0x382   : > { %v1272_v15 = vmax.f32 %v1240_v2, 0.0  ;;  %v1294_v26 = vmax.f32 %v1262_v4, 0.0  ;;  %v1169_v32 = vpop.f32.mrf.mxu0  ;;  %v1543_v4 = vld [vmem:[%s1812_s23 + $0xa0] sm:$0xff] }
 0x383   : > { %v1273_v18 = vmax.f32 %v1241_v19, 0.0  ;;  %v1295_v28 = vmax.f32 %v1263_v25, 0.0  ;;  %v1242_v37 = vadd.f32 %v1533_v7, %v1168_v47  ;;  %v1170_v9 = vadd.f32 %v1169_v32, %v2403_v50  ;;  %v1544_v19 = vld [vmem:[%s1812_s23 + $0xa8] sm:$0xff]  ;;  %s1661_s23 = smov [#allocation5]  }
 0x384   : > { %1304 = vst [vmem:[%s2421_s13 + $0x40] sm:$0xff] %v1272_v15  ;;  %1326 = vst [vmem:[%s2421_s13 + $0xf0] sm:$0xff] %v1294_v26  ;;  %v1173_v14 = vpop.f32.mrf.mxu0  ;;  %s1577_s10 = sshll.u32 %s1661_s23, 4  ;;  %s1578_s10 = int_to_ptr.vmem [resolvable:$false] %s1577_s10 }
 0x385   : > { %1305 = vst [vmem:[%s2421_s13 + $0x48] sm:$0xff] %v1273_v18  ;;  %1327 = vst [vmem:[%s2421_s13 + $0xf8] sm:$0xff] %v1295_v28  ;;  %v1274_v31 = vmax.f32 %v1242_v37, 0.0  ;;  %v1243_v13 = vadd.f32 %v1534_v35, %v1170_v9  ;;  %v1174_v41 = vadd.f32 %v1173_v14, %v2405_v17  ;;  %s1579_s12 = scalar_lea.vmem %s1578_s10, 8192  ;;  %p1580_p5 = scmp.lt.s32.totalorder %s2506_s22, %s1578_s10 }
 0x386   : > { %v1175_v22 = vpop.f32.mrf.mxu0  ;;  %p1581_p7 = scmp.lt.s32.totalorder %s1579_s12, %s1573_s9 }
 0x387   : > { %1306 = vst [vmem:[%s2421_s13 + $0x50] sm:$0xff] %v1274_v31  ;;  %v1275_v46 = vmax.f32 %v1243_v13, 0.0  ;;  %v1244_v50 = vadd.f32 %v1535_v38, %v1174_v41  ;;  %v1176_v30 = vadd.f32 %v1175_v22, %v2405_v17 }
 0x388   : > { %v1179_v60 = vpop.f32.mrf.mxu0  ;;  %p1582_p8 = por %p1581_p7, %p1580_p5 }
 0x389   : > { %1307 = vst [vmem:[%s2421_s13 + $0x58] sm:$0xff] %v1275_v46  ;;  %v1276_v24 = vmax.f32 %v1244_v50, 0.0  ;;  %v1245_v3 = vadd.f32 %v1536_v8, %v1176_v30  ;;  %v1180_v36 = vadd.f32 %v1179_v60, %v2407_v62 }
 0x38a   : > { %v1181_v49 = vpop.f32.mrf.mxu0  ;;  %p1583_p10 = pnand %p1582_p8, %p1576_p4 }
 0x38b   : > { %1308 = vst [vmem:[%s2421_s13 + $0x60] sm:$0xff] %v1276_v24  ;;  %v1277_v16 = vmax.f32 %v1245_v3, 0.0  ;;  %v1246_v52 = vadd.f32 %v1537_v27, %v1180_v36  ;;  %v1182_v53 = vadd.f32 %v1181_v49, %v2407_v62 }
 0x38c   : > { %v1185_v17 = vpop.f32.mrf.mxu0 }
 0x38d   : > { %1309 = vst [vmem:[%s2421_s13 + $0x68] sm:$0xff] %v1277_v16  ;;  %v1278_v23 = vmax.f32 %v1246_v52, 0.0  ;;  %v1247_v45 = vadd.f32 %v1538_v39, %v1182_v53  ;;  %v1186_v54 = vadd.f32 %v1185_v17, %v2409_v0 }
 0x38e   : > { %v1187_v29 = vpop.f32.mrf.mxu0 }
 0x38f   : > { %1310 = vst [vmem:[%s2421_s13 + $0x70] sm:$0xff] %v1278_v23  ;;  %v1279_v56 = vmax.f32 %v1247_v45, 0.0  ;;  %v1248_v51 = vadd.f32 %v1539_v44, %v1186_v54  ;;  %v1188_v21 = vadd.f32 %v1187_v29, %v2409_v0 }
 0x390   : > { %v1191_v62 = vpop.f32.mrf.mxu0 }
 0x391   : > { %1311 = vst [vmem:[%s2421_s13 + $0x78] sm:$0xff] %v1279_v56  ;;  %v1280_v57 = vmax.f32 %v1248_v51, 0.0  ;;  %v1249_v63 = vadd.f32 %v1540_v61, %v1188_v21  ;;  %v1192_v42 = vadd.f32 %v1191_v62, %v2411_v43 }
 0x392   : > { %v1193_v55 = vpop.f32.mrf.mxu0 }
 0x393   : > { %1312 = vst [vmem:[%s2421_s13 + $0x80] sm:$0xff] %v1280_v57  ;;  %v1281_v58 = vmax.f32 %v1249_v63, 0.0  ;;  %v1250_v11 = vadd.f32 %v1541_v34, %v1192_v42  ;;  %v1194_v0 = vadd.f32 %v1193_v55, %v2411_v43 }
 0x394   : > { %v1197_v59 = vpop.f32.mrf.mxu0 }
 0x395   : > { %1313 = vst [vmem:[%s2421_s13 + $0x88] sm:$0xff] %v1281_v58  ;;  %v1282_v33 = vmax.f32 %v1250_v11, 0.0  ;;  %v1251_v10 = vadd.f32 %v1542_v1, %v1194_v0  ;;  %v1198_v12 = vadd.f32 %v1197_v59, %v2413_v48 }
 0x396   : > { %v1199_v2 = vpop.f32.mrf.mxu0 }
 0x397   : > { %1314 = vst [vmem:[%s2421_s13 + $0x90] sm:$0xff] %v1282_v33  ;;  %v1283_v40 = vmax.f32 %v1251_v10, 0.0  ;;  %v1252_v5 = vadd.f32 %v1543_v4, %v1198_v12  ;;  %v1200_v6 = vadd.f32 %v1199_v2, %v2413_v48 }
 0x399   : > { %1315 = vst [vmem:[%s2421_s13 + $0x98] sm:$0xff] %v1283_v40  ;;  %v1284_v43 = vmax.f32 %v1252_v5, 0.0  ;;  %v1253_v20 = vadd.f32 %v1544_v19, %v1200_v6 }
 0x39b   : > { %1316 = vst [vmem:[%s2421_s13 + $0xa0] sm:$0xff] %v1284_v43  ;;  %v1285_v25 = vmax.f32 %v1253_v20, 0.0 }
 0x39d   : > { %1317 = vst [vmem:[%s2421_s13 + $0xa8] sm:$0xff] %v1285_v25 }
 0x39e   : > { %1586 = shalt.err (!%p1583_p10)
}
 0x39f   : > { %s1587_s19 = scalar_lea.hbm %s2504_s24, 4096  ;;  %s1591_s13 = scalar_lea.hbm %s2559_s8, 8192 }
 0x3a0   : > { %p1588_p0 = scmp.ne.s32.totalorder %s2504_s24, %s1587_s19  ;;  %p1592_p1 = scmp.lt.s32.totalorder %s2504_s24, %s2559_s8 }
 0x3a1   : > { %p1593_p3 = scmp.lt.s32.totalorder %s1591_s13, %s1587_s19 }
 0x3a2   : > { %p1589_p2 = pnand %p1588_p0, %p2569_p12 }
 0x3a3   : > { %p1594_p6 = por %p1593_p3, %p1592_p1 }
 0x3a4   : > { %p1590_p9 = pneg %p1589_p2 }
 0x3a6   : > { %p1595_p11 = pnand %p1594_p6, %p1590_p9 }
 0x3a8   : > { %1598 = shalt.err (!%p1595_p11)
}
 0x3a9   : > { %s1662_s16 = smov 256   ;;  %s1663_s9 = smov 16  }
 0x3aa   : > { %1452 = dma.vmem_to_hbm [thread:$0]  (%p2569_p12), %s2506_s22, 4096, %s2504_s24, %s1329_s26, %s1662_s16, %s1662_s16, %s1663_s9  }
 0x3ab PF: > { %s1357_s23 = sand.u32 1, %s1625_s27   ;;  %p2570_p13 = scmp.ne.s32.totalorder %s2566_s18, 0 }
 0x3ac   : > { %p2571_p4 = scmp.ge.s32.totalorder %s1637_s30, 2  ;;  %s1358_s10 = scalar_lea.sflag [#allocation4], %s1357_s23 }
 0x3ae   : > { %p1459_p5 = pnand %p2571_p4, %p2570_p13 }
 0x3b0   : > { %p1460_p7 = pneg %p1459_p5 }
 0x3b2   : > { %1620 = dma.done.wait (%p1460_p7), %s1358_s10, 4096  }
 0x3b3   : > { %1622 = vsyncadd (%p1460_p7), %s1358_s10, 4294963200  ;;  %s2572_s12 = sld [smem:[#allocation8_spill]]  ;;  %p21_p8 = scmp.ge.s32.totalorder %s1734_s11, 4  }
 0x3b4   : > { %s2573_s27 = smov %s1629_s28  ;;  %s2574_s28 = smov %s1633_s29 }
 0x3b5   : > { %s2576_s30 = smov %s1734_s11  ;;  %23 = sbr.rel (!%p21_p8) target bundleno = 5 (0x5), region = 97 }
 0x3b9   : > { %s2575_s29 = smov %s2572_s12 }
 0x3ba   :  { %1363 = vsyncpa [#allocation3], 1 }
 0x3bb   :  { %1365 = vsyncpa [#allocation3 + $0x1], 1 }
 0x3bc   :  { %1366 = vsyncpa [#allocation4], 1 }
 0x3bd   :  { %1368 = vsyncpa [#allocation4 + $0x1], 1 }

</bundles_post_ra>
